<compile_context>
chip_gen: v6e
topology: v6e:2x2x1
jax: 0.10.0
libtpu: 0.0.40
codegen_flags: <defaults>
</compile_context>

<pallas_src>
import functools

import jax
import jax.numpy as jnp
from jax.experimental import pallas as pl
from jax.experimental.pallas import tpu as pltpu

EPS = 1e-12
_LANE = 128


# ----------------------------------------------------------------------------
# Fused kernel: all layers of the TDCN block for one batch element per grid step
# ----------------------------------------------------------------------------
def _tdcn_block_kernel(dilations, K, F, S, T_valid, eps,
                       x_ref, film_ref, wb_ref, hvec_ref, wos_ref, pb_ref,
                       out_ref, skip_ref):
    # hvec columns (per layer, per hidden channel H):
    #   [0:K]  depthwise taps      [K]   depthwise bias
    #   [K+1]  bottleneck bias     [K+2] gLN1 gamma   [K+3] gLN1 beta
    #   [K+4]  gLN2 gamma          [K+5] gLN2 beta
    x = x_ref[0].astype(jnp.float32)                        # (F, Tp)
    Tp = x.shape[1]
    H = wb_ref.shape[1]
    n_inv = 1.0 / float(H * T_valid)
    n_inv8 = n_inv / 8.0                                    # reducer has 8 identical rows

    t_idx = jax.lax.broadcasted_iota(jnp.int32, (1, Tp), 1)  # hoisted; reused by all taps
    red8 = jnp.ones((8, H), jnp.float32)                     # MXU sublane-reduction operand
    valid = None
    if T_valid < Tp:                                         # lane-padded path: mask pad cols
        valid = (t_idx < T_valid).astype(jnp.float32)        # (1, Tp)
    skip_acc = jnp.zeros((S, Tp), jnp.float32)

    def gln_stats(h):
        # Channel (sublane) reduction on the MXU -> (8, Tp); only a small lane
        # reduce of the result is left on the XLU.  Stats kept in f32.
        hm = h if valid is None else h * valid
        s1 = jnp.dot(red8, hm, preferred_element_type=jnp.float32)
        s2 = jnp.dot(red8, hm * hm, preferred_element_type=jnp.float32)
        mean = jnp.sum(s1) * n_inv8
        msq = jnp.sum(s2) * n_inv8
        var = jnp.maximum(msq - mean * mean, 0.0)            # clamp guards cancellation
        return mean, jax.lax.rsqrt(var + eps)

    for l, d in enumerate(dilations):
        wb = wb_ref[l]                                       # (H, F)   bf16
        hv = hvec_ref[l]                                     # (H, K+6) f32
        wos = wos_ref[l]                                     # (F+S, H) bf16
        pb = pb_ref[l]                                       # (F+S, 1) f32
        f_scale = film_ref[0, :, 2 * l:2 * l + 1]            # (H, 1)
        f_bias = film_ref[0, :, 2 * l + 1:2 * l + 2]         # (H, 1)

        # --- bottleneck 1x1 conv: bf16 MXU operands, f32 accumulation ---
        h = jnp.dot(wb, x.astype(jnp.bfloat16),
                    preferred_element_type=jnp.float32) + hv[:, K + 1:K + 2]

        # --- gLN over (H, T_valid): MXU stats folded into one per-channel FMA ---
        mean, inv = gln_stats(h)
        a1 = hv[:, K + 2:K + 3] * inv                        # gamma * inv
        c1 = hv[:, K + 3:K + 4] - mean * a1                  # beta - mean*gamma*inv
        h = h * a1 + c1

        # --- non-causal "same"-padded dilated depthwise conv (roll + masked taps) ---
        pad_left = ((K - 1) * d) // 2
        acc = None
        for k in range(K):
            off = k * d - pad_left                           # tap offset into padded signal
            tap = h if off == 0 else pltpu.roll(h, shift=(-off) % Tp, axis=1)
            if off < 0:
                tap = jnp.where(t_idx >= -off, tap, 0.0)     # single compare per tap
            elif off > 0:
                tap = jnp.where(t_idx < T_valid - off, tap, 0.0)
            term = hv[:, k:k + 1] * tap
            acc = term if acc is None else acc + term

        # --- FiLM folded with depthwise bias: scale*(acc + bdw) + bias ---
        y = acc * f_scale + (f_scale * hv[:, K:K + 1] + f_bias)

        # --- second gLN (same MXU stats + FMA fold) ---
        mean2, inv2 = gln_stats(y)
        a2 = hv[:, K + 4:K + 5] * inv2
        c2 = hv[:, K + 5:K + 6] - mean2 * a2
        y = y * a2 + c2

        # --- fused output+skip pointwise convs: one bf16 (F+S, H) @ (H, T) matmul ---
        z = jnp.dot(wos, y.astype(jnp.bfloat16),
                    preferred_element_type=jnp.float32) + pb
        x = z[:F] + x                                        # residual update (next layer input)
        skip_acc = skip_acc + z[F:]                          # skip accumulation in VMEM

    out_ref[0] = x.astype(out_ref.dtype)
    skip_ref[0] = skip_acc.astype(skip_ref.dtype)


# ----------------------------------------------------------------------------
# Parameter packing (PyTorch-like per-layer dicts -> stacked, lane-packed arrays)
# ----------------------------------------------------------------------------
def _pack_params(layer_params, matmul_dtype=jnp.bfloat16):
    wb = jnp.stack([p['wb'] for p in layer_params]).astype(matmul_dtype)     # (L, H, F)
    hvec = jnp.stack([
        jnp.concatenate([p['wdw'],
                         p['bdw'][:, None], p['bb'][:, None],
                         p['g1'][:, None], p['be1'][:, None],
                         p['g2'][:, None], p['be2'][:, None]], axis=1)
        for p in layer_params])                                              # (L, H, K+6)  f32
    wos = jnp.stack([jnp.concatenate([p['wo'], p['ws']], axis=0)
                     for p in layer_params]).astype(matmul_dtype)            # (L, F+S, H)
    pb = jnp.stack([jnp.concatenate([p['bo'], p['bs']])[:, None]
                    for p in layer_params])                                  # (L, F+S, 1)  f32
    return wb, hvec, wos, pb


def _estimate_vmem_bytes(B, F, S, H, T, L, K):
    f32, bf16 = 4, 2
    io = 2 * f32 * (2 * F * T + S * T + H * 2 * L)          # double-buffered x/out/skip/film
    w = 2 * (bf16 * L * (H * F + (F + S) * H) + f32 * L * (H * (K + 6) + (F + S)))
    tmp = 6 * f32 * H * T                                    # live (H,T) temporaries
    return io + w + tmp


def _device_kind():
    try:
        return jax.devices()[0].device_kind.lower()
    except Exception:
        return ""


# ----------------------------------------------------------------------------
# Wrapper: ConditionedTimeDilatedConvBlock1d forward
# ----------------------------------------------------------------------------
def conditioned_tdcn_block(x, scales, biases, layer_params, kernel_size=3,
                           dilated=True, eps=EPS):
    """Fused forward. x: (B, F, T); scales/biases: lists of (B, H).

    Returns (output (B, F, T), skip_connection (B, S, T))."""
    B, F, T = x.shape
    L = len(layer_params)
    H = layer_params[0]['wb'].shape[0]
    S = layer_params[0]['ws'].shape[0]
    # TODO(synk): dilated=False uses stride=2 in PyTorch; only the default
    #             dilated=True / stride=1 path is implemented.
    dilations = tuple((2 ** i if dilated else 1) for i in range(L))

    # Pad T to a lane multiple so output stores stay unmasked; gLN stats inside
    # the kernel use the true T and mask pad columns.
    Tp = max(_LANE, ((T + _LANE - 1) // _LANE) * _LANE)
    if Tp != T:
        x = jnp.pad(x, ((0, 0), (0, 0), (0, Tp - T)))

    wb, hvec, wos, pb = _pack_params(layer_params)
    # FiLM scale/bias packed as (B, H, 2L): [..., 2l] = scale_l, [..., 2l+1] = bias_l
    film = jnp.stack([arr for l in range(L) for arr in (scales[l], biases[l])], axis=-1)

    kernel = functools.partial(_tdcn_block_kernel, dilations, kernel_size, F, S, T, eps)

    def full_spec(arr):
        nd = arr.ndim
        return pl.BlockSpec(arr.shape, lambda b, _nd=nd: (0,) * _nd)

    grid_spec = pltpu.PrefetchScalarGridSpec(
        num_scalar_prefetch=0,
        grid=(B,),
        in_specs=[
            pl.BlockSpec((1, F, Tp), lambda b: (b, 0, 0)),       # x (lane-padded)
            pl.BlockSpec((1, H, 2 * L), lambda b: (b, 0, 0)),    # packed FiLM scale/bias
            full_spec(wb),                                       # stacked bottleneck weights
            full_spec(hvec),                                     # packed per-channel vectors
            full_spec(wos),                                      # stacked [wo; ws]
            full_spec(pb),                                       # stacked [bo; bs]
        ],
        out_specs=(
            pl.BlockSpec((1, F, Tp), lambda b: (b, 0, 0)),
            pl.BlockSpec((1, S, Tp), lambda b: (b, 0, 0)),
        ),
    )

    kind = _device_kind()
    is_v7 = ("v7" in kind) or ("7x" in kind)

    # Per-generation VMEM cap (v7x has 64 MiB physical; v5e/v6e have 128 MiB).
    est = _estimate_vmem_bytes(B, F, S, H, Tp, L, kernel_size)
    cap = (56 << 20) if is_v7 else (100 << 20)
    vmem_limit = None
    if est > (32 << 20):
        vmem_limit = min(int(est * 1.25) + (1 << 20), cap)
        # TODO(synk): if est exceeds `cap`, a T-tiled two-pass gLN path is required
        #             (not implemented); the whole-(H,T) design is used regardless.

    # On v7x, shard the (independent) batch axis across the 2 TensorCores.
    if is_v7 and B > 1:
        batch_sem = getattr(pltpu, "CORE_PARALLEL", "parallel")
    else:
        batch_sem = "parallel"

    out, skip = pl.pallas_call(
        kernel,
        out_shape=(jax.ShapeDtypeStruct((B, F, Tp), jnp.float32),
                   jax.ShapeDtypeStruct((B, S, Tp), jnp.float32)),
        grid_spec=grid_spec,
        compiler_params=pltpu.CompilerParams(
            dimension_semantics=(batch_sem,),
            vmem_limit_bytes=vmem_limit,
        ),
    )(x, film, wb, hvec, wos, pb)

    if Tp != T:
        out = out[:, :, :T]
        skip = skip[:, :, :T]
    return out, skip


# ----------------------------------------------------------------------------
# Parameter init (PyTorch-layout per-layer dicts) + pure-JAX reference
# ----------------------------------------------------------------------------
def init_params(key, num_features, hidden, skip_channels, kernel_size, num_layers):
    params = []
    for i in range(num_layers):
        ks = jax.random.split(jax.random.fold_in(key, i), 8)
        params.append({
            'wb': 0.1 * jax.random.normal(ks[0], (hidden, num_features), jnp.float32),
            'bb': 0.1 * jax.random.normal(ks[1], (hidden,), jnp.float32),
            'g1': jnp.ones((hidden,), jnp.float32),
            'be1': jnp.zeros((hidden,), jnp.float32),
            'wdw': 0.1 * jax.random.normal(ks[2], (hidden, kernel_size), jnp.float32),
            'bdw': 0.1 * jax.random.normal(ks[3], (hidden,), jnp.float32),
            'g2': jnp.ones((hidden,), jnp.float32),
            'be2': jnp.zeros((hidden,), jnp.float32),
            'wo': 0.1 * jax.random.normal(ks[4], (num_features, hidden), jnp.float32),
            'bo': 0.1 * jax.random.normal(ks[5], (num_features,), jnp.float32),
            'ws': 0.1 * jax.random.normal(ks[6], (skip_channels, hidden), jnp.float32),
            'bs': 0.1 * jax.random.normal(ks[7], (skip_channels,), jnp.float32),
        })
    return params


def _reference(x, scales, biases, params, kernel_size, dilated, eps):
    """Pure-JAX f32 reference matching the PyTorch module's default forward."""
    B, F, T = x.shape

    def gln(h, g, b):
        mean = jnp.mean(h, axis=(1, 2), keepdims=True)
        var = jnp.mean((h - mean) ** 2, axis=(1, 2), keepdims=True)
        return (h - mean) / jnp.sqrt(var + eps) * g[None, :, None] + b[None, :, None]

    skip_total = 0.0
    for idx, p in enumerate(params):
        d = 2 ** idx if dilated else 1
        h = jnp.einsum('hf,bft->bht', p['wb'], x) + p['bb'][None, :, None]
        h = gln(h, p['g1'], p['be1'])
        pad = (kernel_size - 1) * d
        pad_l = pad // 2
        hp = jnp.pad(h, ((0, 0), (0, 0), (pad_l, pad - pad_l)))
        y = sum(p['wdw'][None, :, k:k + 1] * hp[:, :, k * d:k * d + T]
                for k in range(kernel_size)) + p['bdw'][None, :, None]
        y = scales[idx][:, :, None] * y + biases[idx][:, :, None]
        y = gln(y, p['g2'], p['be2'])
        out = jnp.einsum('fh,bht->bft', p['wo'], y) + p['bo'][None, :, None]
        skip = jnp.einsum('sh,bht->bst', p['ws'], y) + p['bs'][None, :, None]
        x = out + x
        skip_total = skip_total + skip
    return x, skip_total


if __name__ == "__main__":
    key = jax.random.PRNGKey(0)

    def run_case(B, F, H, S, T, K, L, salt):
        kx, ksc, kbi, kp = jax.random.split(jax.random.fold_in(key, salt), 4)
        x = jax.random.normal(kx, (B, F, T), jnp.float32)
        scales = [jax.random.normal(jax.random.fold_in(ksc, i), (B, H), jnp.float32)
                  for i in range(L)]
        biases = [jax.random.normal(jax.random.fold_in(kbi, i), (B, H), jnp.float32)
                  for i in range(L)]
        params = init_params(kp, F, H, S, K, L)

        out, skip = conditioned_tdcn_block(x, scales, biases, params, kernel_size=K)
        jax.block_until_ready((out, skip))
        assert out.shape == (B, F, T) and skip.shape == (B, S, T)

        ref_out, ref_skip = _reference(x, scales, biases, params, K, True, EPS)
        # Tolerances sized for bf16 MXU inputs (~3 significant digits) compounded
        # over L layers; the reference is pure f32.
        assert jnp.allclose(out, ref_out, atol=2e-2, rtol=2e-2)
        assert jnp.allclose(skip, ref_skip, atol=2e-2, rtol=2e-2)

        def rel(a, b):
            return float(jnp.sqrt(jnp.sum((a - b) ** 2)) /
                         (jnp.sqrt(jnp.sum(b ** 2)) + 1e-12))
        assert rel(out, ref_out) < 1e-2
        assert rel(skip, ref_skip) < 1e-2

    # Lane-aligned T (no padding path) and ragged T (padded + masked-stats path).
    run_case(B=2, F=8, H=16, S=16, T=128, K=3, L=3, salt=0)
    run_case(B=2, F=8, H=16, S=8, T=100, K=3, L=3, salt=1)
    print("KERNEL_OK")
</pallas_src>

<mosaic_0001>
module attributes {stable_mosaic.version = 11 : i64} {
  func.func @_tdcn_block_kernel(%arg0: i32, %arg1: memref<1x8x128xf32, #tpu.memory_space<vmem>>, %arg2: memref<1x16x6xf32, #tpu.memory_space<vmem>>, %arg3: memref<3x16x8xbf16, #tpu.memory_space<vmem>>, %arg4: memref<3x16x9xf32, #tpu.memory_space<vmem>>, %arg5: memref<3x24x16xbf16, #tpu.memory_space<vmem>>, %arg6: memref<3x24x1xf32, #tpu.memory_space<vmem>>, %arg7: memref<1x8x128xf32, #tpu.memory_space<vmem>>, %arg8: memref<1x16x128xf32, #tpu.memory_space<vmem>>) attributes {dimension_semantics = [#tpu.dimension_semantics<parallel>], iteration_bounds = array<i64: 2>, scalar_prefetch = 0 : i64, scratch_operands = 0 : i64, tpu.core_type = #tpu.core_type<tc>, window_params = [{transform_indices = @transform_0, window_bounds = array<i64: 1, 8, 128>}, {transform_indices = @transform_1, window_bounds = array<i64: 1, 16, 6>}, {pipeline_mode = #tpu.pipeline_mode<synchronous>, transform_indices = @transform_2, window_bounds = array<i64: 3, 16, 8>}, {pipeline_mode = #tpu.pipeline_mode<synchronous>, transform_indices = @transform_3, window_bounds = array<i64: 3, 16, 9>}, {pipeline_mode = #tpu.pipeline_mode<synchronous>, transform_indices = @transform_4, window_bounds = array<i64: 3, 24, 16>}, {pipeline_mode = #tpu.pipeline_mode<synchronous>, transform_indices = @transform_5, window_bounds = array<i64: 3, 24, 1>}, {transform_indices = @transform_6, window_bounds = array<i64: 1, 8, 128>}, {transform_indices = @transform_7, window_bounds = array<i64: 1, 16, 128>}]} {
    %c0 = arith.constant 0 : index
    %c0_0 = arith.constant 0 : index
    %c0_1 = arith.constant 0 : index
    %0 = vector.load %arg1[%c0, %c0_0, %c0_1] : memref<1x8x128xf32, #tpu.memory_space<vmem>>, vector<1x8x128xf32>
    %1 = vector.shape_cast %0 : vector<1x8x128xf32> to vector<8x128xf32>
    %2 = tpu.iota {dimensions = array<i32: 1>} : vector<1x128xi32>
    %cst = arith.constant 1.000000e+00 : f32
    %3 = vector.broadcast %cst : f32 to vector<8x16xf32>
    %cst_2 = arith.constant 0.000000e+00 : f32
    %4 = vector.broadcast %cst_2 : f32 to vector<16x128xf32>
    %c0_3 = arith.constant 0 : index
    %c0_4 = arith.constant 0 : index
    %c0_5 = arith.constant 0 : index
    %5 = vector.load %arg3[%c0_3, %c0_4, %c0_5] : memref<3x16x8xbf16, #tpu.memory_space<vmem>>, vector<1x16x8xbf16>
    %6 = vector.shape_cast %5 : vector<1x16x8xbf16> to vector<16x8xbf16>
    %c0_6 = arith.constant 0 : index
    %c0_7 = arith.constant 0 : index
    %c0_8 = arith.constant 0 : index
    %7 = vector.load %arg4[%c0_6, %c0_7, %c0_8] : memref<3x16x9xf32, #tpu.memory_space<vmem>>, vector<1x16x9xf32>
    %8 = vector.shape_cast %7 : vector<1x16x9xf32> to vector<16x9xf32>
    %c0_9 = arith.constant 0 : index
    %c0_10 = arith.constant 0 : index
    %c0_11 = arith.constant 0 : index
    %9 = vector.load %arg5[%c0_9, %c0_10, %c0_11] : memref<3x24x16xbf16, #tpu.memory_space<vmem>>, vector<1x24x16xbf16>
    %10 = vector.shape_cast %9 : vector<1x24x16xbf16> to vector<24x16xbf16>
    %c0_12 = arith.constant 0 : index
    %c0_13 = arith.constant 0 : index
    %c0_14 = arith.constant 0 : index
    %11 = vector.load %arg6[%c0_12, %c0_13, %c0_14] : memref<3x24x1xf32, #tpu.memory_space<vmem>>, vector<1x24x1xf32>
    %12 = vector.shape_cast %11 : vector<1x24x1xf32> to vector<24x1xf32>
    %c0_15 = arith.constant 0 : index
    %c0_16 = arith.constant 0 : index
    %c0_17 = arith.constant 0 : index
    %13 = vector.load %arg2[%c0_15, %c0_16, %c0_17] : memref<1x16x6xf32, #tpu.memory_space<vmem>>, vector<1x16x1xf32>
    %14 = vector.shape_cast %13 : vector<1x16x1xf32> to vector<16x1xf32>
    %c0_18 = arith.constant 0 : index
    %c0_19 = arith.constant 0 : index
    %c1 = arith.constant 1 : index
    %15 = vector.load %arg2[%c0_18, %c0_19, %c1] : memref<1x16x6xf32, #tpu.memory_space<vmem>>, vector<1x16x1xf32>
    %16 = vector.shape_cast %15 : vector<1x16x1xf32> to vector<16x1xf32>
    %17 = arith.truncf %1 : vector<8x128xf32> to vector<8x128xbf16>
    %cst_20 = arith.constant dense<0.000000e+00> : vector<16x128xf32>
    %18 = tpu.matmul %6, %17, %cst_20 {dimension_numbers = #tpu.dot_dimension_numbers<[1], [0], [0], [1], [0, 0, 1, 1], [], []>} : vector<16x8xbf16>, vector<8x128xbf16>, vector<16x128xf32> -> vector<16x128xf32>
    %19 = vector.extract_strided_slice %8 {offsets = [0, 4], sizes = [16, 1], strides = [1, 1]} : vector<16x9xf32> to vector<16x1xf32>
    %20 = vector.broadcast %19 : vector<16x1xf32> to vector<16x128xf32>
    %21 = arith.addf %18, %20 : vector<16x128xf32>
    %cst_21 = arith.constant dense<0.000000e+00> : vector<8x128xf32>
    %22 = tpu.matmul %3, %21, %cst_21 {dimension_numbers = #tpu.dot_dimension_numbers<[1], [0], [0], [1], [0, 0, 1, 1], [], []>} : vector<8x16xf32>, vector<16x128xf32>, vector<8x128xf32> -> vector<8x128xf32>
    %23 = arith.mulf %21, %21 : vector<16x128xf32>
    %cst_22 = arith.constant dense<0.000000e+00> : vector<8x128xf32>
    %24 = tpu.matmul %3, %23, %cst_22 {dimension_numbers = #tpu.dot_dimension_numbers<[1], [0], [0], [1], [0, 0, 1, 1], [], []>} : vector<8x16xf32>, vector<16x128xf32>, vector<8x128xf32> -> vector<8x128xf32>
    %25 = vector.shape_cast %22 : vector<8x128xf32> to vector<1x8x128xf32>
    %cst_23 = arith.constant dense<0.000000e+00> : vector<1xf32>
    %26 = vector.multi_reduction <add>, %25, %cst_23 [1, 2] : vector<1x8x128xf32> to vector<1xf32>
    %27 = vector.shape_cast %26 : vector<1xf32> to vector<1x1x1xf32>
    %28 = vector.extract %27[0, 0, 0] : f32 from vector<1x1x1xf32>
    %cst_24 = arith.constant 6.10351563E-5 : f32
    %29 = arith.mulf %28, %cst_24 : f32
    %30 = vector.shape_cast %24 : vector<8x128xf32> to vector<1x8x128xf32>
    %cst_25 = arith.constant dense<0.000000e+00> : vector<1xf32>
    %31 = vector.multi_reduction <add>, %30, %cst_25 [1, 2] : vector<1x8x128xf32> to vector<1xf32>
    %32 = vector.shape_cast %31 : vector<1xf32> to vector<1x1x1xf32>
    %33 = vector.extract %32[0, 0, 0] : f32 from vector<1x1x1xf32>
    %cst_26 = arith.constant 6.10351563E-5 : f32
    %34 = arith.mulf %33, %cst_26 : f32
    %35 = arith.mulf %29, %29 : f32
    %36 = arith.subf %34, %35 : f32
    %cst_27 = arith.constant 0.000000e+00 : f32
    %37 = arith.maximumf %36, %cst_27 : f32
    %cst_28 = arith.constant 9.99999996E-13 : f32
    %38 = arith.addf %37, %cst_28 : f32
    %39 = math.rsqrt %38 : f32
    %40 = vector.extract_strided_slice %8 {offsets = [0, 5], sizes = [16, 1], strides = [1, 1]} : vector<16x9xf32> to vector<16x1xf32>
    %41 = vector.broadcast %39 : f32 to vector<16x1xf32>
    %42 = arith.mulf %40, %41 : vector<16x1xf32>
    %43 = vector.extract_strided_slice %8 {offsets = [0, 6], sizes = [16, 1], strides = [1, 1]} : vector<16x9xf32> to vector<16x1xf32>
    %44 = vector.broadcast %29 : f32 to vector<16x1xf32>
    %45 = arith.mulf %44, %42 : vector<16x1xf32>
    %46 = arith.subf %43, %45 : vector<16x1xf32>
    %47 = vector.broadcast %42 : vector<16x1xf32> to vector<16x128xf32>
    %48 = arith.mulf %21, %47 : vector<16x128xf32>
    %49 = vector.broadcast %46 : vector<16x1xf32> to vector<16x128xf32>
    %50 = arith.addf %48, %49 : vector<16x128xf32>
    %c1_i32 = arith.constant 1 : i32
    %51 = tpu.dynamic_rotate %50 by %c1_i32 dim 1 : vector<16x128xf32>, i32 -> vector<16x128xf32>
    %c1_i32_29 = arith.constant 1 : i32
    %52 = vector.broadcast %c1_i32_29 : i32 to vector<1x128xi32>
    %53 = arith.cmpi sge, %2, %52 : vector<1x128xi32>
    %cst_30 = arith.constant 0.000000e+00 : f32
    %54 = vector.shape_cast %53 : vector<1x128xi1> to vector<1x128xi1>
    %55 = vector.broadcast %54 : vector<1x128xi1> to vector<16x128xi1>
    %56 = vector.broadcast %cst_30 : f32 to vector<16x128xf32>
    %57 = arith.select %55, %51, %56 : vector<16x128xi1>, vector<16x128xf32>
    %58 = vector.extract_strided_slice %8 {offsets = [0, 0], sizes = [16, 1], strides = [1, 1]} : vector<16x9xf32> to vector<16x1xf32>
    %59 = vector.broadcast %58 : vector<16x1xf32> to vector<16x128xf32>
    %60 = arith.mulf %59, %57 : vector<16x128xf32>
    %61 = vector.extract_strided_slice %8 {offsets = [0, 1], sizes = [16, 1], strides = [1, 1]} : vector<16x9xf32> to vector<16x1xf32>
    %62 = vector.broadcast %61 : vector<16x1xf32> to vector<16x128xf32>
    %63 = arith.mulf %62, %50 : vector<16x128xf32>
    %64 = arith.addf %60, %63 : vector<16x128xf32>
    %c127_i32 = arith.constant 127 : i32
    %65 = tpu.dynamic_rotate %50 by %c127_i32 dim 1 : vector<16x128xf32>, i32 -> vector<16x128xf32>
    %c127_i32_31 = arith.constant 127 : i32
    %66 = vector.broadcast %c127_i32_31 : i32 to vector<1x128xi32>
    %67 = arith.cmpi slt, %2, %66 : vector<1x128xi32>
    %cst_32 = arith.constant 0.000000e+00 : f32
    %68 = vector.shape_cast %67 : vector<1x128xi1> to vector<1x128xi1>
    %69 = vector.broadcast %68 : vector<1x128xi1> to vector<16x128xi1>
    %70 = vector.broadcast %cst_32 : f32 to vector<16x128xf32>
    %71 = arith.select %69, %65, %70 : vector<16x128xi1>, vector<16x128xf32>
    %72 = vector.extract_strided_slice %8 {offsets = [0, 2], sizes = [16, 1], strides = [1, 1]} : vector<16x9xf32> to vector<16x1xf32>
    %73 = vector.broadcast %72 : vector<16x1xf32> to vector<16x128xf32>
    %74 = arith.mulf %73, %71 : vector<16x128xf32>
    %75 = arith.addf %64, %74 : vector<16x128xf32>
    %76 = vector.broadcast %14 : vector<16x1xf32> to vector<16x128xf32>
    %77 = arith.mulf %75, %76 : vector<16x128xf32>
    %78 = vector.extract_strided_slice %8 {offsets = [0, 3], sizes = [16, 1], strides = [1, 1]} : vector<16x9xf32> to vector<16x1xf32>
    %79 = arith.mulf %14, %78 : vector<16x1xf32>
    %80 = arith.addf %79, %16 : vector<16x1xf32>
    %81 = vector.broadcast %80 : vector<16x1xf32> to vector<16x128xf32>
    %82 = arith.addf %77, %81 : vector<16x128xf32>
    %cst_33 = arith.constant dense<0.000000e+00> : vector<8x128xf32>
    %83 = tpu.matmul %3, %82, %cst_33 {dimension_numbers = #tpu.dot_dimension_numbers<[1], [0], [0], [1], [0, 0, 1, 1], [], []>} : vector<8x16xf32>, vector<16x128xf32>, vector<8x128xf32> -> vector<8x128xf32>
    %84 = arith.mulf %82, %82 : vector<16x128xf32>
    %cst_34 = arith.constant dense<0.000000e+00> : vector<8x128xf32>
    %85 = tpu.matmul %3, %84, %cst_34 {dimension_numbers = #tpu.dot_dimension_numbers<[1], [0], [0], [1], [0, 0, 1, 1], [], []>} : vector<8x16xf32>, vector<16x128xf32>, vector<8x128xf32> -> vector<8x128xf32>
    %86 = vector.shape_cast %83 : vector<8x128xf32> to vector<1x8x128xf32>
    %cst_35 = arith.constant dense<0.000000e+00> : vector<1xf32>
    %87 = vector.multi_reduction <add>, %86, %cst_35 [1, 2] : vector<1x8x128xf32> to vector<1xf32>
    %88 = vector.shape_cast %87 : vector<1xf32> to vector<1x1x1xf32>
    %89 = vector.extract %88[0, 0, 0] : f32 from vector<1x1x1xf32>
    %cst_36 = arith.constant 6.10351563E-5 : f32
    %90 = arith.mulf %89, %cst_36 : f32
    %91 = vector.shape_cast %85 : vector<8x128xf32> to vector<1x8x128xf32>
    %cst_37 = arith.constant dense<0.000000e+00> : vector<1xf32>
    %92 = vector.multi_reduction <add>, %91, %cst_37 [1, 2] : vector<1x8x128xf32> to vector<1xf32>
    %93 = vector.shape_cast %92 : vector<1xf32> to vector<1x1x1xf32>
    %94 = vector.extract %93[0, 0, 0] : f32 from vector<1x1x1xf32>
    %cst_38 = arith.constant 6.10351563E-5 : f32
    %95 = arith.mulf %94, %cst_38 : f32
    %96 = arith.mulf %90, %90 : f32
    %97 = arith.subf %95, %96 : f32
    %cst_39 = arith.constant 0.000000e+00 : f32
    %98 = arith.maximumf %97, %cst_39 : f32
    %cst_40 = arith.constant 9.99999996E-13 : f32
    %99 = arith.addf %98, %cst_40 : f32
    %100 = math.rsqrt %99 : f32
    %101 = vector.extract_strided_slice %8 {offsets = [0, 7], sizes = [16, 1], strides = [1, 1]} : vector<16x9xf32> to vector<16x1xf32>
    %102 = vector.broadcast %100 : f32 to vector<16x1xf32>
    %103 = arith.mulf %101, %102 : vector<16x1xf32>
    %104 = vector.extract_strided_slice %8 {offsets = [0, 8], sizes = [16, 1], strides = [1, 1]} : vector<16x9xf32> to vector<16x1xf32>
    %105 = vector.broadcast %90 : f32 to vector<16x1xf32>
    %106 = arith.mulf %105, %103 : vector<16x1xf32>
    %107 = arith.subf %104, %106 : vector<16x1xf32>
    %108 = vector.broadcast %103 : vector<16x1xf32> to vector<16x128xf32>
    %109 = arith.mulf %82, %108 : vector<16x128xf32>
    %110 = vector.broadcast %107 : vector<16x1xf32> to vector<16x128xf32>
    %111 = arith.addf %109, %110 : vector<16x128xf32>
    %112 = arith.truncf %111 : vector<16x128xf32> to vector<16x128xbf16>
    %cst_41 = arith.constant dense<0.000000e+00> : vector<24x128xf32>
    %113 = tpu.matmul %10, %112, %cst_41 {dimension_numbers = #tpu.dot_dimension_numbers<[1], [0], [0], [1], [0, 0, 1, 1], [], []>} : vector<24x16xbf16>, vector<16x128xbf16>, vector<24x128xf32> -> vector<24x128xf32>
    %114 = vector.broadcast %12 : vector<24x1xf32> to vector<24x128xf32>
    %115 = arith.addf %113, %114 : vector<24x128xf32>
    %116 = vector.extract_strided_slice %115 {offsets = [0, 0], sizes = [8, 128], strides = [1, 1]} : vector<24x128xf32> to vector<8x128xf32>
    %117 = arith.addf %116, %1 : vector<8x128xf32>
    %118 = vector.extract_strided_slice %115 {offsets = [8, 0], sizes = [16, 128], strides = [1, 1]} : vector<24x128xf32> to vector<16x128xf32>
    %119 = arith.addf %4, %118 : vector<16x128xf32>
    %c1_42 = arith.constant 1 : index
    %c0_43 = arith.constant 0 : index
    %c0_44 = arith.constant 0 : index
    %120 = vector.load %arg3[%c1_42, %c0_43, %c0_44] : memref<3x16x8xbf16, #tpu.memory_space<vmem>>, vector<1x16x8xbf16>
    %121 = vector.shape_cast %120 : vector<1x16x8xbf16> to vector<16x8xbf16>
    %c1_45 = arith.constant 1 : index
    %c0_46 = arith.constant 0 : index
    %c0_47 = arith.constant 0 : index
    %122 = vector.load %arg4[%c1_45, %c0_46, %c0_47] : memref<3x16x9xf32, #tpu.memory_space<vmem>>, vector<1x16x9xf32>
    %123 = vector.shape_cast %122 : vector<1x16x9xf32> to vector<16x9xf32>
    %c1_48 = arith.constant 1 : index
    %c0_49 = arith.constant 0 : index
    %c0_50 = arith.constant 0 : index
    %124 = vector.load %arg5[%c1_48, %c0_49, %c0_50] : memref<3x24x16xbf16, #tpu.memory_space<vmem>>, vector<1x24x16xbf16>
    %125 = vector.shape_cast %124 : vector<1x24x16xbf16> to vector<24x16xbf16>
    %c1_51 = arith.constant 1 : index
    %c0_52 = arith.constant 0 : index
    %c0_53 = arith.constant 0 : index
    %126 = vector.load %arg6[%c1_51, %c0_52, %c0_53] : memref<3x24x1xf32, #tpu.memory_space<vmem>>, vector<1x24x1xf32>
    %127 = vector.shape_cast %126 : vector<1x24x1xf32> to vector<24x1xf32>
    %c0_54 = arith.constant 0 : index
    %c0_55 = arith.constant 0 : index
    %c2 = arith.constant 2 : index
    %128 = vector.load %arg2[%c0_54, %c0_55, %c2] : memref<1x16x6xf32, #tpu.memory_space<vmem>>, vector<1x16x1xf32>
    %129 = vector.shape_cast %128 : vector<1x16x1xf32> to vector<16x1xf32>
    %c0_56 = arith.constant 0 : index
    %c0_57 = arith.constant 0 : index
    %c3 = arith.constant 3 : index
    %130 = vector.load %arg2[%c0_56, %c0_57, %c3] : memref<1x16x6xf32, #tpu.memory_space<vmem>>, vector<1x16x1xf32>
    %131 = vector.shape_cast %130 : vector<1x16x1xf32> to vector<16x1xf32>
    %132 = arith.truncf %117 : vector<8x128xf32> to vector<8x128xbf16>
    %cst_58 = arith.constant dense<0.000000e+00> : vector<16x128xf32>
    %133 = tpu.matmul %121, %132, %cst_58 {dimension_numbers = #tpu.dot_dimension_numbers<[1], [0], [0], [1], [0, 0, 1, 1], [], []>} : vector<16x8xbf16>, vector<8x128xbf16>, vector<16x128xf32> -> vector<16x128xf32>
    %134 = vector.extract_strided_slice %123 {offsets = [0, 4], sizes = [16, 1], strides = [1, 1]} : vector<16x9xf32> to vector<16x1xf32>
    %135 = vector.broadcast %134 : vector<16x1xf32> to vector<16x128xf32>
    %136 = arith.addf %133, %135 : vector<16x128xf32>
    %cst_59 = arith.constant dense<0.000000e+00> : vector<8x128xf32>
    %137 = tpu.matmul %3, %136, %cst_59 {dimension_numbers = #tpu.dot_dimension_numbers<[1], [0], [0], [1], [0, 0, 1, 1], [], []>} : vector<8x16xf32>, vector<16x128xf32>, vector<8x128xf32> -> vector<8x128xf32>
    %138 = arith.mulf %136, %136 : vector<16x128xf32>
    %cst_60 = arith.constant dense<0.000000e+00> : vector<8x128xf32>
    %139 = tpu.matmul %3, %138, %cst_60 {dimension_numbers = #tpu.dot_dimension_numbers<[1], [0], [0], [1], [0, 0, 1, 1], [], []>} : vector<8x16xf32>, vector<16x128xf32>, vector<8x128xf32> -> vector<8x128xf32>
    %140 = vector.shape_cast %137 : vector<8x128xf32> to vector<1x8x128xf32>
    %cst_61 = arith.constant dense<0.000000e+00> : vector<1xf32>
    %141 = vector.multi_reduction <add>, %140, %cst_61 [1, 2] : vector<1x8x128xf32> to vector<1xf32>
    %142 = vector.shape_cast %141 : vector<1xf32> to vector<1x1x1xf32>
    %143 = vector.extract %142[0, 0, 0] : f32 from vector<1x1x1xf32>
    %cst_62 = arith.constant 6.10351563E-5 : f32
    %144 = arith.mulf %143, %cst_62 : f32
    %145 = vector.shape_cast %139 : vector<8x128xf32> to vector<1x8x128xf32>
    %cst_63 = arith.constant dense<0.000000e+00> : vector<1xf32>
    %146 = vector.multi_reduction <add>, %145, %cst_63 [1, 2] : vector<1x8x128xf32> to vector<1xf32>
    %147 = vector.shape_cast %146 : vector<1xf32> to vector<1x1x1xf32>
    %148 = vector.extract %147[0, 0, 0] : f32 from vector<1x1x1xf32>
    %cst_64 = arith.constant 6.10351563E-5 : f32
    %149 = arith.mulf %148, %cst_64 : f32
    %150 = arith.mulf %144, %144 : f32
    %151 = arith.subf %149, %150 : f32
    %cst_65 = arith.constant 0.000000e+00 : f32
    %152 = arith.maximumf %151, %cst_65 : f32
    %cst_66 = arith.constant 9.99999996E-13 : f32
    %153 = arith.addf %152, %cst_66 : f32
    %154 = math.rsqrt %153 : f32
    %155 = vector.extract_strided_slice %123 {offsets = [0, 5], sizes = [16, 1], strides = [1, 1]} : vector<16x9xf32> to vector<16x1xf32>
    %156 = vector.broadcast %154 : f32 to vector<16x1xf32>
    %157 = arith.mulf %155, %156 : vector<16x1xf32>
    %158 = vector.extract_strided_slice %123 {offsets = [0, 6], sizes = [16, 1], strides = [1, 1]} : vector<16x9xf32> to vector<16x1xf32>
    %159 = vector.broadcast %144 : f32 to vector<16x1xf32>
    %160 = arith.mulf %159, %157 : vector<16x1xf32>
    %161 = arith.subf %158, %160 : vector<16x1xf32>
    %162 = vector.broadcast %157 : vector<16x1xf32> to vector<16x128xf32>
    %163 = arith.mulf %136, %162 : vector<16x128xf32>
    %164 = vector.broadcast %161 : vector<16x1xf32> to vector<16x128xf32>
    %165 = arith.addf %163, %164 : vector<16x128xf32>
    %c2_i32 = arith.constant 2 : i32
    %166 = tpu.dynamic_rotate %165 by %c2_i32 dim 1 : vector<16x128xf32>, i32 -> vector<16x128xf32>
    %c2_i32_67 = arith.constant 2 : i32
    %167 = vector.broadcast %c2_i32_67 : i32 to vector<1x128xi32>
    %168 = arith.cmpi sge, %2, %167 : vector<1x128xi32>
    %cst_68 = arith.constant 0.000000e+00 : f32
    %169 = vector.shape_cast %168 : vector<1x128xi1> to vector<1x128xi1>
    %170 = vector.broadcast %169 : vector<1x128xi1> to vector<16x128xi1>
    %171 = vector.broadcast %cst_68 : f32 to vector<16x128xf32>
    %172 = arith.select %170, %166, %171 : vector<16x128xi1>, vector<16x128xf32>
    %173 = vector.extract_strided_slice %123 {offsets = [0, 0], sizes = [16, 1], strides = [1, 1]} : vector<16x9xf32> to vector<16x1xf32>
    %174 = vector.broadcast %173 : vector<16x1xf32> to vector<16x128xf32>
    %175 = arith.mulf %174, %172 : vector<16x128xf32>
    %176 = vector.extract_strided_slice %123 {offsets = [0, 1], sizes = [16, 1], strides = [1, 1]} : vector<16x9xf32> to vector<16x1xf32>
    %177 = vector.broadcast %176 : vector<16x1xf32> to vector<16x128xf32>
    %178 = arith.mulf %177, %165 : vector<16x128xf32>
    %179 = arith.addf %175, %178 : vector<16x128xf32>
    %c126_i32 = arith.constant 126 : i32
    %180 = tpu.dynamic_rotate %165 by %c126_i32 dim 1 : vector<16x128xf32>, i32 -> vector<16x128xf32>
    %c126_i32_69 = arith.constant 126 : i32
    %181 = vector.broadcast %c126_i32_69 : i32 to vector<1x128xi32>
    %182 = arith.cmpi slt, %2, %181 : vector<1x128xi32>
    %cst_70 = arith.constant 0.000000e+00 : f32
    %183 = vector.shape_cast %182 : vector<1x128xi1> to vector<1x128xi1>
    %184 = vector.broadcast %183 : vector<1x128xi1> to vector<16x128xi1>
    %185 = vector.broadcast %cst_70 : f32 to vector<16x128xf32>
    %186 = arith.select %184, %180, %185 : vector<16x128xi1>, vector<16x128xf32>
    %187 = vector.extract_strided_slice %123 {offsets = [0, 2], sizes = [16, 1], strides = [1, 1]} : vector<16x9xf32> to vector<16x1xf32>
    %188 = vector.broadcast %187 : vector<16x1xf32> to vector<16x128xf32>
    %189 = arith.mulf %188, %186 : vector<16x128xf32>
    %190 = arith.addf %179, %189 : vector<16x128xf32>
    %191 = vector.broadcast %129 : vector<16x1xf32> to vector<16x128xf32>
    %192 = arith.mulf %190, %191 : vector<16x128xf32>
    %193 = vector.extract_strided_slice %123 {offsets = [0, 3], sizes = [16, 1], strides = [1, 1]} : vector<16x9xf32> to vector<16x1xf32>
    %194 = arith.mulf %129, %193 : vector<16x1xf32>
    %195 = arith.addf %194, %131 : vector<16x1xf32>
    %196 = vector.broadcast %195 : vector<16x1xf32> to vector<16x128xf32>
    %197 = arith.addf %192, %196 : vector<16x128xf32>
    %cst_71 = arith.constant dense<0.000000e+00> : vector<8x128xf32>
    %198 = tpu.matmul %3, %197, %cst_71 {dimension_numbers = #tpu.dot_dimension_numbers<[1], [0], [0], [1], [0, 0, 1, 1], [], []>} : vector<8x16xf32>, vector<16x128xf32>, vector<8x128xf32> -> vector<8x128xf32>
    %199 = arith.mulf %197, %197 : vector<16x128xf32>
    %cst_72 = arith.constant dense<0.000000e+00> : vector<8x128xf32>
    %200 = tpu.matmul %3, %199, %cst_72 {dimension_numbers = #tpu.dot_dimension_numbers<[1], [0], [0], [1], [0, 0, 1, 1], [], []>} : vector<8x16xf32>, vector<16x128xf32>, vector<8x128xf32> -> vector<8x128xf32>
    %201 = vector.shape_cast %198 : vector<8x128xf32> to vector<1x8x128xf32>
    %cst_73 = arith.constant dense<0.000000e+00> : vector<1xf32>
    %202 = vector.multi_reduction <add>, %201, %cst_73 [1, 2] : vector<1x8x128xf32> to vector<1xf32>
    %203 = vector.shape_cast %202 : vector<1xf32> to vector<1x1x1xf32>
    %204 = vector.extract %203[0, 0, 0] : f32 from vector<1x1x1xf32>
    %cst_74 = arith.constant 6.10351563E-5 : f32
    %205 = arith.mulf %204, %cst_74 : f32
    %206 = vector.shape_cast %200 : vector<8x128xf32> to vector<1x8x128xf32>
    %cst_75 = arith.constant dense<0.000000e+00> : vector<1xf32>
    %207 = vector.multi_reduction <add>, %206, %cst_75 [1, 2] : vector<1x8x128xf32> to vector<1xf32>
    %208 = vector.shape_cast %207 : vector<1xf32> to vector<1x1x1xf32>
    %209 = vector.extract %208[0, 0, 0] : f32 from vector<1x1x1xf32>
    %cst_76 = arith.constant 6.10351563E-5 : f32
    %210 = arith.mulf %209, %cst_76 : f32
    %211 = arith.mulf %205, %205 : f32
    %212 = arith.subf %210, %211 : f32
    %cst_77 = arith.constant 0.000000e+00 : f32
    %213 = arith.maximumf %212, %cst_77 : f32
    %cst_78 = arith.constant 9.99999996E-13 : f32
    %214 = arith.addf %213, %cst_78 : f32
    %215 = math.rsqrt %214 : f32
    %216 = vector.extract_strided_slice %123 {offsets = [0, 7], sizes = [16, 1], strides = [1, 1]} : vector<16x9xf32> to vector<16x1xf32>
    %217 = vector.broadcast %215 : f32 to vector<16x1xf32>
    %218 = arith.mulf %216, %217 : vector<16x1xf32>
    %219 = vector.extract_strided_slice %123 {offsets = [0, 8], sizes = [16, 1], strides = [1, 1]} : vector<16x9xf32> to vector<16x1xf32>
    %220 = vector.broadcast %205 : f32 to vector<16x1xf32>
    %221 = arith.mulf %220, %218 : vector<16x1xf32>
    %222 = arith.subf %219, %221 : vector<16x1xf32>
    %223 = vector.broadcast %218 : vector<16x1xf32> to vector<16x128xf32>
    %224 = arith.mulf %197, %223 : vector<16x128xf32>
    %225 = vector.broadcast %222 : vector<16x1xf32> to vector<16x128xf32>
    %226 = arith.addf %224, %225 : vector<16x128xf32>
    %227 = arith.truncf %226 : vector<16x128xf32> to vector<16x128xbf16>
    %cst_79 = arith.constant dense<0.000000e+00> : vector<24x128xf32>
    %228 = tpu.matmul %125, %227, %cst_79 {dimension_numbers = #tpu.dot_dimension_numbers<[1], [0], [0], [1], [0, 0, 1, 1], [], []>} : vector<24x16xbf16>, vector<16x128xbf16>, vector<24x128xf32> -> vector<24x128xf32>
    %229 = vector.broadcast %127 : vector<24x1xf32> to vector<24x128xf32>
    %230 = arith.addf %228, %229 : vector<24x128xf32>
    %231 = vector.extract_strided_slice %230 {offsets = [0, 0], sizes = [8, 128], strides = [1, 1]} : vector<24x128xf32> to vector<8x128xf32>
    %232 = arith.addf %231, %117 : vector<8x128xf32>
    %233 = vector.extract_strided_slice %230 {offsets = [8, 0], sizes = [16, 128], strides = [1, 1]} : vector<24x128xf32> to vector<16x128xf32>
    %234 = arith.addf %119, %233 : vector<16x128xf32>
    %c2_80 = arith.constant 2 : index
    %c0_81 = arith.constant 0 : index
    %c0_82 = arith.constant 0 : index
    %235 = vector.load %arg3[%c2_80, %c0_81, %c0_82] : memref<3x16x8xbf16, #tpu.memory_space<vmem>>, vector<1x16x8xbf16>
    %236 = vector.shape_cast %235 : vector<1x16x8xbf16> to vector<16x8xbf16>
    %c2_83 = arith.constant 2 : index
    %c0_84 = arith.constant 0 : index
    %c0_85 = arith.constant 0 : index
    %237 = vector.load %arg4[%c2_83, %c0_84, %c0_85] : memref<3x16x9xf32, #tpu.memory_space<vmem>>, vector<1x16x9xf32>
    %238 = vector.shape_cast %237 : vector<1x16x9xf32> to vector<16x9xf32>
    %c2_86 = arith.constant 2 : index
    %c0_87 = arith.constant 0 : index
    %c0_88 = arith.constant 0 : index
    %239 = vector.load %arg5[%c2_86, %c0_87, %c0_88] : memref<3x24x16xbf16, #tpu.memory_space<vmem>>, vector<1x24x16xbf16>
    %240 = vector.shape_cast %239 : vector<1x24x16xbf16> to vector<24x16xbf16>
    %c2_89 = arith.constant 2 : index
    %c0_90 = arith.constant 0 : index
    %c0_91 = arith.constant 0 : index
    %241 = vector.load %arg6[%c2_89, %c0_90, %c0_91] : memref<3x24x1xf32, #tpu.memory_space<vmem>>, vector<1x24x1xf32>
    %242 = vector.shape_cast %241 : vector<1x24x1xf32> to vector<24x1xf32>
    %c0_92 = arith.constant 0 : index
    %c0_93 = arith.constant 0 : index
    %c4 = arith.constant 4 : index
    %243 = vector.load %arg2[%c0_92, %c0_93, %c4] : memref<1x16x6xf32, #tpu.memory_space<vmem>>, vector<1x16x1xf32>
    %244 = vector.shape_cast %243 : vector<1x16x1xf32> to vector<16x1xf32>
    %c0_94 = arith.constant 0 : index
    %c0_95 = arith.constant 0 : index
    %c5 = arith.constant 5 : index
    %245 = vector.load %arg2[%c0_94, %c0_95, %c5] : memref<1x16x6xf32, #tpu.memory_space<vmem>>, vector<1x16x1xf32>
    %246 = vector.shape_cast %245 : vector<1x16x1xf32> to vector<16x1xf32>
    %247 = arith.truncf %232 : vector<8x128xf32> to vector<8x128xbf16>
    %cst_96 = arith.constant dense<0.000000e+00> : vector<16x128xf32>
    %248 = tpu.matmul %236, %247, %cst_96 {dimension_numbers = #tpu.dot_dimension_numbers<[1], [0], [0], [1], [0, 0, 1, 1], [], []>} : vector<16x8xbf16>, vector<8x128xbf16>, vector<16x128xf32> -> vector<16x128xf32>
    %249 = vector.extract_strided_slice %238 {offsets = [0, 4], sizes = [16, 1], strides = [1, 1]} : vector<16x9xf32> to vector<16x1xf32>
    %250 = vector.broadcast %249 : vector<16x1xf32> to vector<16x128xf32>
    %251 = arith.addf %248, %250 : vector<16x128xf32>
    %cst_97 = arith.constant dense<0.000000e+00> : vector<8x128xf32>
    %252 = tpu.matmul %3, %251, %cst_97 {dimension_numbers = #tpu.dot_dimension_numbers<[1], [0], [0], [1], [0, 0, 1, 1], [], []>} : vector<8x16xf32>, vector<16x128xf32>, vector<8x128xf32> -> vector<8x128xf32>
    %253 = arith.mulf %251, %251 : vector<16x128xf32>
    %cst_98 = arith.constant dense<0.000000e+00> : vector<8x128xf32>
    %254 = tpu.matmul %3, %253, %cst_98 {dimension_numbers = #tpu.dot_dimension_numbers<[1], [0], [0], [1], [0, 0, 1, 1], [], []>} : vector<8x16xf32>, vector<16x128xf32>, vector<8x128xf32> -> vector<8x128xf32>
    %255 = vector.shape_cast %252 : vector<8x128xf32> to vector<1x8x128xf32>
    %cst_99 = arith.constant dense<0.000000e+00> : vector<1xf32>
    %256 = vector.multi_reduction <add>, %255, %cst_99 [1, 2] : vector<1x8x128xf32> to vector<1xf32>
    %257 = vector.shape_cast %256 : vector<1xf32> to vector<1x1x1xf32>
    %258 = vector.extract %257[0, 0, 0] : f32 from vector<1x1x1xf32>
    %cst_100 = arith.constant 6.10351563E-5 : f32
    %259 = arith.mulf %258, %cst_100 : f32
    %260 = vector.shape_cast %254 : vector<8x128xf32> to vector<1x8x128xf32>
    %cst_101 = arith.constant dense<0.000000e+00> : vector<1xf32>
    %261 = vector.multi_reduction <add>, %260, %cst_101 [1, 2] : vector<1x8x128xf32> to vector<1xf32>
    %262 = vector.shape_cast %261 : vector<1xf32> to vector<1x1x1xf32>
    %263 = vector.extract %262[0, 0, 0] : f32 from vector<1x1x1xf32>
    %cst_102 = arith.constant 6.10351563E-5 : f32
    %264 = arith.mulf %263, %cst_102 : f32
    %265 = arith.mulf %259, %259 : f32
    %266 = arith.subf %264, %265 : f32
    %cst_103 = arith.constant 0.000000e+00 : f32
    %267 = arith.maximumf %266, %cst_103 : f32
    %cst_104 = arith.constant 9.99999996E-13 : f32
    %268 = arith.addf %267, %cst_104 : f32
    %269 = math.rsqrt %268 : f32
    %270 = vector.extract_strided_slice %238 {offsets = [0, 5], sizes = [16, 1], strides = [1, 1]} : vector<16x9xf32> to vector<16x1xf32>
    %271 = vector.broadcast %269 : f32 to vector<16x1xf32>
    %272 = arith.mulf %270, %271 : vector<16x1xf32>
    %273 = vector.extract_strided_slice %238 {offsets = [0, 6], sizes = [16, 1], strides = [1, 1]} : vector<16x9xf32> to vector<16x1xf32>
    %274 = vector.broadcast %259 : f32 to vector<16x1xf32>
    %275 = arith.mulf %274, %272 : vector<16x1xf32>
    %276 = arith.subf %273, %275 : vector<16x1xf32>
    %277 = vector.broadcast %272 : vector<16x1xf32> to vector<16x128xf32>
    %278 = arith.mulf %251, %277 : vector<16x128xf32>
    %279 = vector.broadcast %276 : vector<16x1xf32> to vector<16x128xf32>
    %280 = arith.addf %278, %279 : vector<16x128xf32>
    %c4_i32 = arith.constant 4 : i32
    %281 = tpu.dynamic_rotate %280 by %c4_i32 dim 1 : vector<16x128xf32>, i32 -> vector<16x128xf32>
    %c4_i32_105 = arith.constant 4 : i32
    %282 = vector.broadcast %c4_i32_105 : i32 to vector<1x128xi32>
    %283 = arith.cmpi sge, %2, %282 : vector<1x128xi32>
    %cst_106 = arith.constant 0.000000e+00 : f32
    %284 = vector.shape_cast %283 : vector<1x128xi1> to vector<1x128xi1>
    %285 = vector.broadcast %284 : vector<1x128xi1> to vector<16x128xi1>
    %286 = vector.broadcast %cst_106 : f32 to vector<16x128xf32>
    %287 = arith.select %285, %281, %286 : vector<16x128xi1>, vector<16x128xf32>
    %288 = vector.extract_strided_slice %238 {offsets = [0, 0], sizes = [16, 1], strides = [1, 1]} : vector<16x9xf32> to vector<16x1xf32>
    %289 = vector.broadcast %288 : vector<16x1xf32> to vector<16x128xf32>
    %290 = arith.mulf %289, %287 : vector<16x128xf32>
    %291 = vector.extract_strided_slice %238 {offsets = [0, 1], sizes = [16, 1], strides = [1, 1]} : vector<16x9xf32> to vector<16x1xf32>
    %292 = vector.broadcast %291 : vector<16x1xf32> to vector<16x128xf32>
    %293 = arith.mulf %292, %280 : vector<16x128xf32>
    %294 = arith.addf %290, %293 : vector<16x128xf32>
    %c124_i32 = arith.constant 124 : i32
    %295 = tpu.dynamic_rotate %280 by %c124_i32 dim 1 : vector<16x128xf32>, i32 -> vector<16x128xf32>
    %c124_i32_107 = arith.constant 124 : i32
    %296 = vector.broadcast %c124_i32_107 : i32 to vector<1x128xi32>
    %297 = arith.cmpi slt, %2, %296 : vector<1x128xi32>
    %cst_108 = arith.constant 0.000000e+00 : f32
    %298 = vector.shape_cast %297 : vector<1x128xi1> to vector<1x128xi1>
    %299 = vector.broadcast %298 : vector<1x128xi1> to vector<16x128xi1>
    %300 = vector.broadcast %cst_108 : f32 to vector<16x128xf32>
    %301 = arith.select %299, %295, %300 : vector<16x128xi1>, vector<16x128xf32>
    %302 = vector.extract_strided_slice %238 {offsets = [0, 2], sizes = [16, 1], strides = [1, 1]} : vector<16x9xf32> to vector<16x1xf32>
    %303 = vector.broadcast %302 : vector<16x1xf32> to vector<16x128xf32>
    %304 = arith.mulf %303, %301 : vector<16x128xf32>
    %305 = arith.addf %294, %304 : vector<16x128xf32>
    %306 = vector.broadcast %244 : vector<16x1xf32> to vector<16x128xf32>
    %307 = arith.mulf %305, %306 : vector<16x128xf32>
    %308 = vector.extract_strided_slice %238 {offsets = [0, 3], sizes = [16, 1], strides = [1, 1]} : vector<16x9xf32> to vector<16x1xf32>
    %309 = arith.mulf %244, %308 : vector<16x1xf32>
    %310 = arith.addf %309, %246 : vector<16x1xf32>
    %311 = vector.broadcast %310 : vector<16x1xf32> to vector<16x128xf32>
    %312 = arith.addf %307, %311 : vector<16x128xf32>
    %cst_109 = arith.constant dense<0.000000e+00> : vector<8x128xf32>
    %313 = tpu.matmul %3, %312, %cst_109 {dimension_numbers = #tpu.dot_dimension_numbers<[1], [0], [0], [1], [0, 0, 1, 1], [], []>} : vector<8x16xf32>, vector<16x128xf32>, vector<8x128xf32> -> vector<8x128xf32>
    %314 = arith.mulf %312, %312 : vector<16x128xf32>
    %cst_110 = arith.constant dense<0.000000e+00> : vector<8x128xf32>
    %315 = tpu.matmul %3, %314, %cst_110 {dimension_numbers = #tpu.dot_dimension_numbers<[1], [0], [0], [1], [0, 0, 1, 1], [], []>} : vector<8x16xf32>, vector<16x128xf32>, vector<8x128xf32> -> vector<8x128xf32>
    %316 = vector.shape_cast %313 : vector<8x128xf32> to vector<1x8x128xf32>
    %cst_111 = arith.constant dense<0.000000e+00> : vector<1xf32>
    %317 = vector.multi_reduction <add>, %316, %cst_111 [1, 2] : vector<1x8x128xf32> to vector<1xf32>
    %318 = vector.shape_cast %317 : vector<1xf32> to vector<1x1x1xf32>
    %319 = vector.extract %318[0, 0, 0] : f32 from vector<1x1x1xf32>
    %cst_112 = arith.constant 6.10351563E-5 : f32
    %320 = arith.mulf %319, %cst_112 : f32
    %321 = vector.shape_cast %315 : vector<8x128xf32> to vector<1x8x128xf32>
    %cst_113 = arith.constant dense<0.000000e+00> : vector<1xf32>
    %322 = vector.multi_reduction <add>, %321, %cst_113 [1, 2] : vector<1x8x128xf32> to vector<1xf32>
    %323 = vector.shape_cast %322 : vector<1xf32> to vector<1x1x1xf32>
    %324 = vector.extract %323[0, 0, 0] : f32 from vector<1x1x1xf32>
    %cst_114 = arith.constant 6.10351563E-5 : f32
    %325 = arith.mulf %324, %cst_114 : f32
    %326 = arith.mulf %320, %320 : f32
    %327 = arith.subf %325, %326 : f32
    %cst_115 = arith.constant 0.000000e+00 : f32
    %328 = arith.maximumf %327, %cst_115 : f32
    %cst_116 = arith.constant 9.99999996E-13 : f32
    %329 = arith.addf %328, %cst_116 : f32
    %330 = math.rsqrt %329 : f32
    %331 = vector.extract_strided_slice %238 {offsets = [0, 7], sizes = [16, 1], strides = [1, 1]} : vector<16x9xf32> to vector<16x1xf32>
    %332 = vector.broadcast %330 : f32 to vector<16x1xf32>
    %333 = arith.mulf %331, %332 : vector<16x1xf32>
    %334 = vector.extract_strided_slice %238 {offsets = [0, 8], sizes = [16, 1], strides = [1, 1]} : vector<16x9xf32> to vector<16x1xf32>
    %335 = vector.broadcast %320 : f32 to vector<16x1xf32>
    %336 = arith.mulf %335, %333 : vector<16x1xf32>
    %337 = arith.subf %334, %336 : vector<16x1xf32>
    %338 = vector.broadcast %333 : vector<16x1xf32> to vector<16x128xf32>
    %339 = arith.mulf %312, %338 : vector<16x128xf32>
    %340 = vector.broadcast %337 : vector<16x1xf32> to vector<16x128xf32>
    %341 = arith.addf %339, %340 : vector<16x128xf32>
    %342 = arith.truncf %341 : vector<16x128xf32> to vector<16x128xbf16>
    %cst_117 = arith.constant dense<0.000000e+00> : vector<24x128xf32>
    %343 = tpu.matmul %240, %342, %cst_117 {dimension_numbers = #tpu.dot_dimension_numbers<[1], [0], [0], [1], [0, 0, 1, 1], [], []>} : vector<24x16xbf16>, vector<16x128xbf16>, vector<24x128xf32> -> vector<24x128xf32>
    %344 = vector.broadcast %242 : vector<24x1xf32> to vector<24x128xf32>
    %345 = arith.addf %343, %344 : vector<24x128xf32>
    %346 = vector.extract_strided_slice %345 {offsets = [0, 0], sizes = [8, 128], strides = [1, 1]} : vector<24x128xf32> to vector<8x128xf32>
    %347 = arith.addf %346, %232 : vector<8x128xf32>
    %348 = vector.extract_strided_slice %345 {offsets = [8, 0], sizes = [16, 128], strides = [1, 1]} : vector<24x128xf32> to vector<16x128xf32>
    %349 = arith.addf %234, %348 : vector<16x128xf32>
    %c0_118 = arith.constant 0 : index
    %c0_119 = arith.constant 0 : index
    %c0_120 = arith.constant 0 : index
    %350 = vector.load %arg7[%c0_118, %c0_119, %c0_120] : memref<1x8x128xf32, #tpu.memory_space<vmem>>, vector<1x8x128xf32>
    %351 = vector.shape_cast %350 : vector<1x8x128xf32> to vector<8x128xf32>
    %352 = vector.shape_cast %347 : vector<8x128xf32> to vector<1x8x128xf32>
    tpu.vector_store %arg7[%c0_118, %c0_119, %c0_120], %352 {strides = array<i32>} : memref<1x8x128xf32, #tpu.memory_space<vmem>>, vector<1x8x128xf32>,
    %c0_121 = arith.constant 0 : index
    %c0_122 = arith.constant 0 : index
    %c0_123 = arith.constant 0 : index
    %353 = vector.load %arg8[%c0_121, %c0_122, %c0_123] : memref<1x16x128xf32, #tpu.memory_space<vmem>>, vector<1x16x128xf32>
    %354 = vector.shape_cast %353 : vector<1x16x128xf32> to vector<16x128xf32>
    %355 = vector.shape_cast %349 : vector<16x128xf32> to vector<1x16x128xf32>
    tpu.vector_store %arg8[%c0_121, %c0_122, %c0_123], %355 {strides = array<i32>} : memref<1x16x128xf32, #tpu.memory_space<vmem>>, vector<1x16x128xf32>,
    return
  }
  func.func @transform_0(%arg0: i32) -> (i32, i32, i32) {
    %c0_i32 = arith.constant 0 : i32
    %c0_i32_0 = arith.constant 0 : i32
    %c0_i32_1 = arith.constant 0 : i32
    return %arg0, %c0_i32, %c0_i32_0 : i32, i32, i32
  }
  func.func @transform_1(%arg0: i32) -> (i32, i32, i32) {
    %c0_i32 = arith.constant 0 : i32
    %c0_i32_0 = arith.constant 0 : i32
    %c0_i32_1 = arith.constant 0 : i32
    return %arg0, %c0_i32, %c0_i32_0 : i32, i32, i32
  }
  func.func @transform_2(%arg0: i32) -> (i32, i32, i32) {
    %c0_i32 = arith.constant 0 : i32
    %c0_i32_0 = arith.constant 0 : i32
    %c0_i32_1 = arith.constant 0 : i32
    %c0_i32_2 = arith.constant 0 : i32
    return %c0_i32, %c0_i32_0, %c0_i32_1 : i32, i32, i32
  }
  func.func @transform_3(%arg0: i32) -> (i32, i32, i32) {
    %c0_i32 = arith.constant 0 : i32
    %c0_i32_0 = arith.constant 0 : i32
    %c0_i32_1 = arith.constant 0 : i32
    %c0_i32_2 = arith.constant 0 : i32
    return %c0_i32, %c0_i32_0, %c0_i32_1 : i32, i32, i32
  }
  func.func @transform_4(%arg0: i32) -> (i32, i32, i32) {
    %c0_i32 = arith.constant 0 : i32
    %c0_i32_0 = arith.constant 0 : i32
    %c0_i32_1 = arith.constant 0 : i32
    %c0_i32_2 = arith.constant 0 : i32
    return %c0_i32, %c0_i32_0, %c0_i32_1 : i32, i32, i32
  }
  func.func @transform_5(%arg0: i32) -> (i32, i32, i32) {
    %c0_i32 = arith.constant 0 : i32
    %c0_i32_0 = arith.constant 0 : i32
    %c0_i32_1 = arith.constant 0 : i32
    %c0_i32_2 = arith.constant 0 : i32
    return %c0_i32, %c0_i32_0, %c0_i32_1 : i32, i32, i32
  }
  func.func @transform_6(%arg0: i32) -> (i32, i32, i32) {
    %c0_i32 = arith.constant 0 : i32
    %c0_i32_0 = arith.constant 0 : i32
    %c0_i32_1 = arith.constant 0 : i32
    return %arg0, %c0_i32, %c0_i32_0 : i32, i32, i32
  }
  func.func @transform_7(%arg0: i32) -> (i32, i32, i32) {
    %c0_i32 = arith.constant 0 : i32
    %c0_i32_0 = arith.constant 0 : i32
    %c0_i32_1 = arith.constant 0 : i32
    return %arg0, %c0_i32, %c0_i32_0 : i32, i32, i32
  }
}

</mosaic_0001>

<bundles_post_ra>
// kernel: tpu_custom_call.1
= control target key start
LH: loop header
LB: loop body
LE: loop exit
PB: predicated region body
PF: predicated region fallthrough
CT: control target
= control target key end

     0   :  { %s3603_s0 = inlined_call_operand.vmem [shape: f32[2,8,128], index: 0, kind: input, shape index: {}]   ;;  %s3604_s1 = inlined_call_operand.vmem [shape: f32[2,16,6], index: 1, kind: input, shape index: {}]   ;;  %s3605_s2 = inlined_call_operand.vmem [shape: bf16[3,16,8], index: 2, kind: input, shape index: {}]   ;;  %s3606_s3 = inlined_call_operand.vmem [shape: f32[3,16,9], index: 3, kind: input, shape index: {}]   ;;  %s3607_s4 = inlined_call_operand.vmem [shape: bf16[3,24,16], index: 4, kind: input, shape index: {}]   ;;  %s3608_s5 = inlined_call_operand.vmem [shape: f32[3,24,1], index: 5, kind: input, shape index: {}]   ;;  %s3609_s6 = inlined_call_operand.hbm [shape: f32[2,8,128], index: 6, kind: output, shape index: {0}]   ;;  %s3610_s7 = inlined_call_operand.hbm [shape: f32[2,16,128], index: 7, kind: output, shape index: {1}]  }
   0x1   :  { %3611 = sst [smem:[#allocation8_spill]] %s3603_s0 }
   0x2   :  { %13 = vsyncpa [#allocation3], 0 }
   0x3   :  { %15 = vsyncpa [#allocation3 + $0x1], 0 }
   0x4   :  { %16 = vsyncpa [#allocation5], 0 }
   0x5   :  { %18 = vsyncpa [#allocation5 + $0x1], 0  ;;  %s3009_s24 = smov 0   ;;  %s3011_s25 = smov 0  }
   0x6   :  { %s3013_s26 = smov 0   ;;  %s3015_s27 = smov 0  }
   0x7 LB: > { %s3030_s28 = sadd.s32 4294967295, %s2944_s27   ;;  %s2442_s29 = sadd.s32 4294967294, %s2944_s27   ;;  %s2944_s27 = sphi %s3015_s27, %s3619_s27   ;;  %s2940_s26 = sphi %s3013_s26, %s3618_s26   ;;  %s2936_s25 = sphi %s3011_s25, %s3617_s25   ;;  %s2932_s24 = sphi %s3009_s24, %s3616_s24  }
   0x8   : > { %s3034_s30 = sadd.s32 1, %s2944_s27   ;;  %s167_s8 = sadd.s32 1, %s2940_s26 }
   0x9   : > { %s164_s9 = ssub.s32 %s2944_s27, %s3034_s30  ;;  %p177_p0 = scmp.ne.s32.totalorder %s2940_s26, %s2936_s25 }
   0xa   : > { %p165_p1 = scmp.eq.s32.totalorder %s164_s9, 0  ;;  %p178_p2 = scmp.eq.s32.totalorder %s3030_s28, 1 }
   0xb   : > { %p183_p3 = scmp.ne.s32.totalorder %s2936_s25, %s2932_s24  ;;  %p184_p4 = scmp.eq.s32.totalorder %s2442_s29, 1 }
   0xc   : > { %s3045_s10 = scalar_select %p165_p1, %s2940_s26, %s167_s8  }
   0xd   : > { %p3047_p5 = por %p178_p2, %p177_p0  ;;  %p3051_p6 = por %p184_p4, %p183_p3 }
   0xe   : > { %p2445_p7 = scmp.ge.s32.totalorder %s2944_s27, 1  ;;  %p255_p8 = scmp.lt.s32.totalorder %s2944_s27, 3 }
  0x10   : > { %p256_p9 = pnand %p2445_p7, %p255_p8 }
  0x11   : > { %p296_p10 = scmp.lt.s32.totalorder (!%p256_p9), %s3030_s28, 1  ;;  %s3614_s0 = sld [smem:[#allocation8_spill]] (!%p256_p9) }
  0x12   : > { %259 = sbr.rel (%p256_p9) target bundleno = 6029 (0x178d), region = 44  ;;  %s2951_s17 = smov (!%p256_p9), 0.0  }
  0x17   : > { %v2946_v0 = vmov 0.0   ;;  %vm2947_vm0 = vmmov 0   ;;  %v3064_v1 = vld [vmem:[%s3606_s3 + $0x8] sm:$0xff]  ;;  %s3067_s15 = scalar_select %p296_p10, %s3030_s28, 1  ;;  %v2948_v2 = vmov 4   ;;  %v3078_v3 = vld [vmem:[%s3606_s3] sm:$0xff] }
  0x18   : > { %2561 = vmatprep.subr.bf16.mxu0 %v2946_v0  ;;  %2563 = vmatprep.mubr.msk.bf16.mxu0 %vm2947_vm0, %v2946_v0  ;;  %vm341_vm1 = vcmask 1043456   ;;  %v2831_v7 = vld [vmem:[%s3605_s2] sm:$0xff]   ;;  %vm337_vm2 = vcmask 64512   ;;  %vm386_vm3 = vcmask 130048   ;;  %v2949_v17 = vmov 1.0  }
  0x19   : > { %2782 = vset.pattern.permute.xlu0 %v2948_v2  ;;  %2567 = vmatprep.subr.mxu1 %v2946_v0  ;;  %s2448_s16 = sshll.u32 %s3067_s15, 3  ;;  %v2950_v37 = vmov 5   ;;  %v2952_v40 = vmov 6   ;;  %s2508_s22 = sshll.u32 %s3067_s15, 4  ;;  %v2955_v53 = vmov 1   ;;  %v2956_v54 = vmov 0  }
  0x1a   : > { %329 = vperm.xlu0 %2782, %v3064_v1   ;;  %2571 = vmatprep.mubr.msk.f32.mxu1 %vm2947_vm0, %v2946_v0  ;;  %s299_s21 = scalar_lea.vmem %s3614_s0, %s2448_s16  ;;  %s2957_s15 = smov 127   ;;  %v2958_v55 = vmov 2  }
  0x1b   : > { %v3083_v4 = vld [vmem:[%s299_s21] sm:$0xff]  ;;  %2785 = vset.pattern.permute.xlu1 %v2952_v40  ;;  %s2953_s21 = smov 1  }
  0x1c   : > { %v321_v5 = vpack.c.bf16 %v3083_v4, %v3083_v4 }
  0x1e   : > { %324 = vperm.xlu0 %2782, %v3078_v3   ;;  %v343_v6 = vsel %vm341_vm1, %v321_v5, 0 }
  0x1f   : > { %2562 = vmatpush3.bf16.msra.mxu0 %v343_v6 }
  0x22   : > { %2564 = vmatmul.mubr.msk.bf16.vlgmr.msra.gmra.mxu0 %vm337_vm2, %v2831_v7  ;;  %2783 = vset.pattern.permute.xlu0 %v2950_v37 }
  0x95   : > { %v330_v8 = vpop.permute.xlu0 %329 }
  0x99   : > { %v325_v11 = vpop.permute.xlu0 %324 }
  0xe2   : > { %v379_v9 = vpop.f32.mrf.mxu0 }
  0xe3   : > { %v3095_v15 = vadd.f32 %v379_v9, %v325_v11 }
  0xe4   : > { %v2565_v10 = vpop.f32.mrf.mxu0 }
  0xe5   : > { %v460_v18 = vmul.f32 %v3095_v15, %v3095_v15 }
  0xe6   : > { %v382_v12 = vpop.f32.mrf.mxu0 }
  0xe7   : > { %v3093_v13 = vadd.f32 %v382_v12, %v330_v8 }
  0xe8   : > { %v2566_v14 = vpop.f32.mrf.mxu0 }
  0xe9   : > { %2568 = vmatpush3.msra.mxu1 %v3093_v13  ;;  %v461_v16 = vmul.f32 %v3093_v13, %v3093_v13 }
  0xea   : > { %2569 = vmatprep.subr.mxu1 %v2946_v0 }
  0xeb   : > { %2570 = vmatpush3.msra.mxu1 %v3095_v15 }
  0xec   : > { %2572 = vmatmul.mubr.msk.f32.vlgmr.msra.gmra.mxu1 %vm386_vm3, %v2949_v17  ;;  %2574 = vmatprep.subr.mxu1 %v2946_v0 }
  0xed   : > { %2575 = vmatpush3.msra.mxu1 %v461_v16  ;;  %2578 = vmatprep.mubr.msk.f32.mxu1 %vm2947_vm0, %v2946_v0 }
  0xee   : > { %2576 = vmatprep.subr.mxu1 %v2946_v0 }
  0xef   : > { %2577 = vmatpush3.msra.mxu1 %v460_v18 }
  0xf0   : > { %2579 = vmatmul.mubr.msk.f32.vlgmr.msra.gmra.mxu1 %vm386_vm3, %v2949_v17  ;;  %2581 = vmatprep.subr.mxu1 %v2946_v0 }
  0xf1   : > { %2585 = vmatprep.mubr.msk.f32.mxu1 %vm2947_vm0, %v2946_v0 }
 0x1ac   : > { %v456_v19 = vpop.f32.mrf.mxu1 }
 0x1ad   : > { %532 = vadd.xlane.f32.xlu1 %v456_v19 }
 0x1ae   : > { %v2573_v20 = vpop.f32.mrf.mxu1 }
 0x1af   : > { %v307_v20 = vlaneseq }
 0x1b0   : > { %v528_v21 = vpop.f32.mrf.mxu1 }
 0x1b1   : > { %542 = vadd.xlane.f32.xlu1 %v528_v21 }
 0x1b2   : > { %v2580_v22 = vpop.f32.mrf.mxu1 }
 0x1b3   : > { %v3172_v22 = vand.u32 127, %v307_v20 }
 0x1b5   : > { %vm603_vm4 = vcmp.ge.s32.totalorder %v3172_v22, 1  ;;  %vm634_vm5 = vcmp.lt.s32.totalorder %v3172_v22, 127  ;;  %vm1271_vm6 = vcmp.ge.s32.totalorder %v3172_v22, 2  ;;  %vm1302_vm7 = vcmp.lt.s32.totalorder %v3172_v22, 126 }
 0x1b6   : > { %vm1931_vm8 = vcmp.ge.s32.totalorder %v3172_v22, 4  ;;  %vm1962_vm9 = vcmp.lt.s32.totalorder %v3172_v22, 124 }
 0x236   : > { %v533_v23 = vpop.xlane.xlu1 %532 }
 0x237   : > { %v534_v24 = vrot.slane %v533_v23, 4 }
 0x239   : > { %v535_v25 = vadd.f32 %v534_v24, %v533_v23 }
 0x23a   : > { %v543_v26 = vpop.xlane.xlu1 %542 }
 0x23b   : > { %v544_v27 = vrot.slane %v543_v26, 4  ;;  %v536_v28 = vrot.slane %v535_v25, 2 }
 0x23d   : > { %v545_v29 = vadd.f32 %v544_v27, %v543_v26  ;;  %v537_v30 = vadd.f32 %v536_v28, %v535_v25 }
 0x23f   : > { %v538_v31 = vrot.slane %v537_v30, 1  ;;  %v546_v32 = vrot.slane %v545_v29, 2 }
 0x241   : > { %v539_v33 = vadd.f32 %v538_v31, %v537_v30  ;;  %v547_v34 = vadd.f32 %v546_v32, %v545_v29 }
 0x243   : > { %2681 = vpush %v539_v33  ;;  %v548_v35 = vrot.slane %v547_v34, 1 }
 0x245   : > { %v549_v36 = vadd.f32 %v548_v35, %v547_v34 }
 0x247   : > { %2683 = vpush %v549_v36 }
 0x274   : > { %s2682_s29 = spop %2681 }
 0x275   : > { %s541_s8 = smul.f32 6.1035156e-05, %s2682_s29 }
 0x277   : > { %s552_s9 = smul.f32 %s541_s8, %s541_s8  ;;  %v562_v44 = vstv %s541_s8  ;;  %s3129_s8 = scalar_lea.vmem %s3604_s1, %s2508_s22 }
 0x278   : > { %s2684_s13 = spop %2683  ;;  %v3134_v51 = vld [vmem:[%s3129_s8] sm:$0xff]  ;;  %v3137_v52 = vld [vmem:[%s3129_s8 + $0x8] sm:$0xff] }
 0x279   : > { %s551_s14 = smul.f32 6.1035156e-05, %s2684_s13 }
 0x27b   : > { %s553_s16 = ssub.f32 %s551_s14, %s552_s9  ;;  %s2954_s9 = smov 125  }
 0x27d   : > { %s554_s18 = smax.f32 %s2951_s17, %s553_s16 }
 0x27e   : > { %s555_s19 = sadd.f32 1e-12, %s554_s18 }
 0x280   : > { %v556_v38 = vstv %s555_s19 }
 0x281   : > { %2840 = vrsqrt.f32 %v556_v38 }
 0x28e   : > { %v2841_v39 = vpop.eup %2840 }
 0x28f   : > { %2685 = vpush %v2841_v39 }
 0x2c0   : > { %s2686_s20 = spop %2685 }
 0x2c1   : > { %v559_v41 = vstv %s2686_s20 }
 0x2c2   : > { %v560_v42 = vmul.f32 %v559_v41, %v3078_v3  ;;  %v561_v43 = vmul.f32 %v559_v41, %v3064_v1 }
 0x2c4   : > { %v563_v45 = vmul.f32 %v562_v44, %v560_v42  ;;  %v564_v46 = vmul.f32 %v562_v44, %v561_v43 }
 0x2c6   : > { %569 = vrot.lane.b32.xlu0 %v564_v46, %s2953_s21  ;;  %567 = vrot.lane.b32.xlu1 %v563_v45, %s2953_s21 }
 0x2ca   : > { %582 = vperm.xlu0 %2783, %v561_v43  }
 0x2ce   : > { %577 = vperm.xlu0 %2783, %v560_v42  }
 0x2d2   : > { %2784 = vset.pattern.permute.xlu0 %v2952_v40 }
 0x338   : > { %v570_v47 = vpop.permute.xlu0 %569  ;;  %v568_v48 = vpop.permute.xlu1 %567 }
 0x339   : > { %v574_v49 = vsub.f32 %v3064_v1, %v570_v47  ;;  %v573_v50 = vsub.f32 %v3078_v3, %v568_v48 }
 0x33b   : > { %594 = vperm.xlu0 %2784, %v574_v49   ;;  %589 = vperm.xlu1 %2785, %v573_v50  }
 0x33f   : > { %663 = vrot.lane.b32.xlu0 %v3078_v3, %s2954_s9  ;;  %665 = vrot.lane.b32.xlu1 %v3064_v1, %s2954_s9 }
 0x340   : > { %2787 = vset.pattern.permute.xlu0 %v2955_v53  ;;  %2786 = vset.pattern.permute.xlu1 %v2956_v54 }
 0x343   : > { %671 = vrot.lane.b32.xlu0 %v3134_v51, %s2957_s15  ;;  %673 = vrot.lane.b32.xlu1 %v3137_v52, %s2957_s15 }
 0x345   : > { %v583_v56 = vpop.permute.xlu0 %582 }
 0x346   : > { %v586_v58 = vmul.f32 %v583_v56, %v3093_v13 }
 0x347   : > { %623 = vperm.xlu0 %2787, %v3064_v1   ;;  %613 = vperm.xlu1 %2786, %v3064_v1  }
 0x349   : > { %v578_v57 = vpop.permute.xlu0 %577 }
 0x34a   : > { %v585_v59 = vmul.f32 %v578_v57, %v3095_v15 }
 0x34b   : > { %609 = vperm.xlu1 %2786, %v3078_v3   ;;  %2789 = vset.pattern.permute.xlu0 %v2958_v55 }
 0x34c   : > { %644 = vperm.xlu0 %2789, %v3064_v1  }
 0x34f   : > { %2788 = vset.pattern.permute.xlu1 %v2955_v53 }
 0x350   : > { %619 = vperm.xlu1 %2788, %v3078_v3   ;;  %2791 = vset.pattern.permute.xlu0 %v2956_v54 }
 0x351   : > { %658 = vperm.xlu0 %2791, %v3137_v52  }
 0x354   : > { %2790 = vset.pattern.permute.xlu1 %v2958_v55 }
 0x355   : > { %640 = vperm.xlu1 %2790, %v3078_v3  }
 0x359   : > { %2792 = vset.pattern.permute.xlu1 %v2956_v54 }
 0x35a   : > { %653 = vperm.xlu1 %2792, %v3134_v51  }
 0x3b6   : > { %v595_v60 = vpop.permute.xlu0 %594  ;;  %v590_v61 = vpop.permute.xlu1 %589 }
 0x3b7   : > { %v598_v62 = vadd.f32 %v595_v60, %v586_v58  ;;  %v597_v63 = vadd.f32 %v590_v61, %v585_v59 }
 0x3b9   : > { %601 = vrot.lane.b32.xlu1 %v598_v62, %s2953_s21  ;;  %599 = vrot.lane.b32.xlu0 %v597_v63, %s2953_s21 }
 0x3ba   : > { %v666_v5 = vpop.permute.xlu1 %665  ;;  %v664_v7 = vpop.permute.xlu0 %663 }
 0x3bb   : > { %v670_v6 = vmul.f32 %v666_v5, %v3137_v52  ;;  %v669_v9 = vmul.f32 %v664_v7, %v3134_v51 }
 0x3bd   : > { %632 = vrot.lane.b32.xlu1 %v598_v62, %s2957_s15 }
 0x3be   : > { %v3164_v8 = vpop.permute.xlu1 %673  ;;  %v3169_v11 = vpop.permute.xlu0 %671 }
 0x3bf   : > { %v678_v10 = vadd.f32 %v3164_v8, %v670_v6  ;;  %v677_v12 = vadd.f32 %v3169_v11, %v669_v9 }
 0x3c1   : > { %630 = vrot.lane.b32.xlu1 %v597_v63, %s2957_s15  ;;  %686 = vperm.xlu0 %2791, %v678_v10  }
 0x3c2   : > { %v614_v13 = vpop.permute.xlu1 %613  ;;  %v624_v16 = vpop.permute.xlu0 %623 }
 0x3c3   : > { %v627_v31 = vmul.f32 %v624_v16, %v598_v62 }
 0x3c5   : > { %681 = vperm.xlu1 %2792, %v677_v12  }
 0x3c6   : > { %v610_v14 = vpop.permute.xlu1 %609 }
 0x3c7   : > { %v645_v19 = vpop.permute.xlu0 %644 }
 0x3cb   : > { %v620_v15 = vpop.permute.xlu1 %619 }
 0x3cc   : > { %v659_v23 = vpop.permute.xlu0 %658  ;;  %v626_v38 = vmul.f32 %v620_v15, %v597_v63 }
 0x3d0   : > { %v641_v18 = vpop.permute.xlu1 %640 }
 0x3d5   : > { %v654_v21 = vpop.permute.xlu1 %653 }
 0x42b   : > { %v602_v24 = vpop.permute.xlu1 %601  ;;  %v600_v26 = vpop.permute.xlu0 %599 }
 0x42c   : > { %v607_v25 = vsel %vm603_vm4, %v602_v24, 0.0  ;;  %v606_v30 = vsel %vm603_vm4, %v600_v26, 0.0 }
 0x42d   : > { %v617_v29 = vmul.f32 %v614_v13, %v607_v25  ;;  %v616_v35 = vmul.f32 %v610_v14, %v606_v30 }
 0x42f   : > { %v633_v27 = vpop.permute.xlu1 %632  ;;  %v629_v36 = vadd.f32 %v627_v31, %v617_v29  ;;  %v628_v42 = vadd.f32 %v626_v38, %v616_v35  ;;  %v2960_v29 = vmov 8   ;;  %v316_v35 = vld [vmem:[%s3608_s5] sm:$0xff] }
 0x430   : > { %v638_v28 = vsel %vm634_vm5, %v633_v27, 0.0 }
 0x431   : > { %v648_v32 = vmul.f32 %v645_v19, %v638_v28  ;;  %v2959_v19 = vmov 7  }
 0x432   : > { %2794 = vset.pattern.permute.xlu1 %v2959_v19  ;;  %2793 = vset.pattern.permute.xlu0 %v2959_v19 }
 0x433   : > { %v631_v33 = vpop.permute.xlu1 %630  ;;  %v650_v41 = vadd.f32 %v648_v32, %v629_v36 }
 0x434   : > { %v637_v34 = vsel %vm634_vm5, %v631_v33, 0.0 }
 0x435   : > { %v647_v39 = vmul.f32 %v641_v18, %v637_v34  ;;  %v662_v44 = vmul.f32 %v659_v23, %v650_v41  ;;  %v2832_v34 = vld [vmem:[%s3607_s4] sm:$0xff]  }
 0x436   : > { %2597 = vmatprep.mubr.msk.bf16.mxu0 %vm386_vm3, %v2832_v34 }
 0x437   : > { %v649_v43 = vadd.f32 %v647_v39, %v628_v42 }
 0x439   : > { %v661_v47 = vmul.f32 %v654_v21, %v649_v43 }
 0x43c   : > { %v687_v45 = vpop.permute.xlu0 %686 }
 0x43d   : > { %v3176_v46 = vadd.f32 %v687_v45, %v662_v44  ;;  %v2833_v45 = vld [vmem:[%s3607_s4 + $0x8] ss:$0 sps:$4 sm:$0xff]  }
 0x43f   : > { %2582 = vmatpush3.msra.mxu1 %v3176_v46  ;;  %v762_v50 = vmul.f32 %v3176_v46, %v3176_v46 }
 0x440   : > { %v682_v48 = vpop.permute.xlu1 %681  ;;  %2583 = vmatprep.subr.mxu1 %v2946_v0 }
 0x441   : > { %v3180_v49 = vadd.f32 %v682_v48, %v661_v47  ;;  %v3236_v47 = vld [vmem:[%s3606_s3 + $0x18] sm:$0xff] }
 0x443   : > { %2584 = vmatpush3.msra.mxu1 %v3180_v49  ;;  %v761_v56 = vmul.f32 %v3180_v49, %v3180_v49 }
 0x444   : > { %2586 = vmatmul.mubr.msk.f32.vlgmr.msra.gmra.mxu1 %vm386_vm3, %v2949_v17  ;;  %2588 = vmatprep.subr.mxu1 %v2946_v0 }
 0x445   : > { %2589 = vmatpush3.msra.mxu1 %v762_v50  ;;  %2592 = vmatprep.mubr.msk.f32.mxu1 %vm2947_vm0, %v2946_v0 }
 0x446   : > { %2590 = vmatprep.subr.mxu1 %v2946_v0 }
 0x447   : > { %2591 = vmatpush3.msra.mxu1 %v761_v56 }
 0x448   : > { %2593 = vmatmul.mubr.msk.f32.vlgmr.msra.gmra.mxu1 %vm386_vm3, %v2949_v17  ;;  %2601 = vmatprep.subr.bf16.mxu1 %v2946_v0 }
 0x449   : > { %2603 = vmatprep.mubr.msk.bf16.mxu1 %vm2947_vm0, %v2946_v0 }
 0x504   : > { %v757_v57 = vpop.f32.mrf.mxu1 }
 0x505   : > { %833 = vadd.xlane.f32.xlu0 %v757_v57 }
 0x506   : > { %v2587_v58 = vpop.f32.mrf.mxu1 }
 0x508   : > { %v829_v59 = vpop.f32.mrf.mxu1 }
 0x509   : > { %843 = vadd.xlane.f32.xlu1 %v829_v59 }
 0x50a   : > { %v2594_v60 = vpop.f32.mrf.mxu1 }
 0x58e   : > { %v834_v61 = vpop.xlane.xlu0 %833 }
 0x58f   : > { %v835_v62 = vrot.slane %v834_v61, 4 }
 0x591   : > { %v836_v63 = vadd.f32 %v835_v62, %v834_v61  ;;  %v2834_v61 = vld [vmem:[%s3605_s2 + $0x8] sm:$0xff]  }
 0x592   : > { %v844_v5 = vpop.xlane.xlu1 %843 }
 0x593   : > { %v837_v6 = vrot.slane %v836_v63, 2  ;;  %v845_v7 = vrot.slane %v844_v5, 4 }
 0x595   : > { %v846_v9 = vadd.f32 %v845_v7, %v844_v5  ;;  %v838_v10 = vadd.f32 %v837_v6, %v836_v63 }
 0x597   : > { %v839_v12 = vrot.slane %v838_v10, 1  ;;  %v847_v13 = vrot.slane %v846_v9, 2 }
 0x599   : > { %v840_v14 = vadd.f32 %v839_v12, %v838_v10  ;;  %v848_v15 = vadd.f32 %v847_v13, %v846_v9 }
 0x59b   : > { %2687 = vpush %v840_v14  ;;  %v849_v16 = vrot.slane %v848_v15, 1 }
 0x59d   : > { %v850_v18 = vadd.f32 %v849_v16, %v848_v15 }
 0x59f   : > { %2689 = vpush %v850_v18 }
 0x5cc   : > { %s2688_s13 = spop %2687 }
 0x5cd   : > { %s842_s14 = smul.f32 6.1035156e-05, %s2688_s13  ;;  %s2962_s13 = smov 126  }
 0x5cf   : > { %s853_s16 = smul.f32 %s842_s14, %s842_s14  ;;  %v863_v26 = vstv %s842_s14 }
 0x5d0   : > { %s2690_s18 = spop %2689 }
 0x5d1   : > { %s852_s19 = smul.f32 6.1035156e-05, %s2690_s18 }
 0x5d3   : > { %s854_s20 = ssub.f32 %s852_s19, %s853_s16 }
 0x5d5   : > { %s855_s22 = smax.f32 %s2951_s17, %s854_s20 }
 0x5d6   : > { %s856_s23 = sadd.f32 1e-12, %s855_s22 }
 0x5d8   : > { %v857_v20 = vstv %s856_s23 }
 0x5d9   : > { %2842 = vrsqrt.f32 %v857_v20 }
 0x5e6   : > { %v2843_v21 = vpop.eup %2842 }
 0x5e7   : > { %2691 = vpush %v2843_v21 }
 0x618   : > { %s2692_s29 = spop %2691 }
 0x619   : > { %v860_v23 = vstv %s2692_s29 }
 0x61a   : > { %v861_v24 = vmul.f32 %v860_v23, %v3078_v3  ;;  %v862_v25 = vmul.f32 %v860_v23, %v3064_v1 }
 0x61c   : > { %v864_v27 = vmul.f32 %v863_v26, %v861_v24  ;;  %v865_v28 = vmul.f32 %v863_v26, %v862_v25 }
 0x61e   : > { %870 = vrot.lane.b32.xlu1 %v865_v28, %s2953_s21  ;;  %868 = vrot.lane.b32.xlu0 %v864_v27, %s2953_s21 }
 0x622   : > { %883 = vperm.xlu1 %2794, %v862_v25   ;;  %878 = vperm.xlu0 %2793, %v861_v24  }
 0x626   : > { %2795 = vset.pattern.permute.xlu1 %v2960_v29  ;;  %2796 = vset.pattern.permute.xlu0 %v2960_v29 }
 0x690   : > { %v871_v30 = vpop.permute.xlu1 %870  ;;  %v869_v31 = vpop.permute.xlu0 %868 }
 0x691   : > { %v875_v32 = vsub.f32 %v3064_v1, %v871_v30  ;;  %v874_v33 = vsub.f32 %v3078_v3, %v869_v31 }
 0x693   : > { %895 = vperm.xlu0 %2796, %v875_v32   ;;  %890 = vperm.xlu1 %2795, %v874_v33  }
 0x697   : > { %2797 = vset.pattern.permute.xlu1 %v2956_v54  ;;  %2799 = vset.pattern.permute.xlu0 %v2948_v2 }
 0x698   : > { %903 = vperm.xlu1 %2797, %v316_v35  }
 0x69c   : > { %2798 = vset.pattern.permute.xlu1 %v2948_v2 }
 0x69d   : > { %v884_v1 = vpop.permute.xlu1 %883  ;;  %v879_v3 = vpop.permute.xlu0 %878  ;;  %1003 = vperm.xlu1 %2798, %v3236_v47  }
 0x69e   : > { %v887_v36 = vmul.f32 %v884_v1, %v3176_v46  ;;  %v886_v38 = vmul.f32 %v879_v3, %v3180_v49  ;;  %v3231_v46 = vld [vmem:[%s3606_s3 + $0x10] sm:$0xff] }
 0x69f   : > { %998 = vperm.xlu0 %2799, %v3231_v46  }
 0x6a1   : > { %2800 = vset.pattern.permute.xlu1 %v2950_v37 }
 0x6a3   : > { %2801 = vset.pattern.permute.xlu0 %v2952_v40 }
 0x70e   : > { %v891_v39 = vpop.permute.xlu1 %890  ;;  %v896_v41 = vpop.permute.xlu0 %895 }
 0x70f   : > { %v898_v42 = vadd.f32 %v891_v39, %v886_v38  ;;  %v899_v43 = vadd.f32 %v896_v41, %v887_v36 }
 0x711   : > { %v900_v44 = vpack.c.bf16 %v899_v43, %v898_v42 }
 0x713   : > { %2595 = vmatprep.subr.bf16.mxu0 %v900_v44  ;;  %v904_v49 = vpop.permute.xlu1 %903 }
 0x714   : > { %2596 = vmatpush3.bf16.msra.mxu0 %v900_v44 }
 0x715   : > { %2607 = vmatprep.subr.mxu0 %v2946_v0 }
 0x717   : > { %2598 = vmatmul.mubr.msk.bf16.vlgmr.msra.gmra.mxu0 %vm386_vm3, %v2833_v45 }
 0x718   : > { %2611 = vmatprep.mubr.msk.f32.mxu0 %vm2947_vm0, %v2946_v0  ;;  %v1004_v5 = vpop.permute.xlu1 %1003 }
 0x7d7   : > { %v3242_v48 = vpop.f32.mrf.mxu0 }
 0x7d9   : > { %v964_v50 = vpop.f32.mrf.mxu0 }
 0x7da   : > { %v965_v56 = vadd.f32 %v964_v50, %v904_v49 }
 0x7db   : > { %v2600_v57 = vpop.f32.mrf.mxu0 }
 0x7dc   : > { %v3245_v58 = vadd.f32 %v965_v56, %v3083_v4  ;;  %v999_v4 = vpop.permute.xlu0 %998 }
 0x7dd   : > { %v3279_v14 = vpop.f32.mrf.mxu0 }
 0x7de   : > { %v995_v59 = vpack.c.bf16 %v3245_v58, %v3245_v58 }
 0x7e0   : > { %v1015_v60 = vsel %vm341_vm1, %v995_v59, 0 }
 0x7e1   : > { %2602 = vmatpush3.bf16.msra.mxu1 %v1015_v60 }
 0x7e2   : > { %2614 = vmatprep.subr.mxu1 %v2946_v0 }
 0x7e4   : > { %2604 = vmatmul.mubr.msk.bf16.vlgmr.msra.gmra.mxu1 %vm337_vm2, %v2834_v61 }
 0x7e5   : > { %2618 = vmatprep.mubr.msk.f32.mxu1 %vm2947_vm0, %v2946_v0 }
 0x8a4   : > { %v1051_v62 = vpop.f32.mrf.mxu1 }
 0x8a5   : > { %v3257_v7 = vadd.f32 %v1051_v62, %v999_v4 }
 0x8a6   : > { %v2605_v63 = vpop.f32.mrf.mxu1 }
 0x8a7   : > { %v1128_v13 = vmul.f32 %v3257_v7, %v3257_v7 }
 0x8a8   : > { %v1054_v6 = vpop.f32.mrf.mxu1 }
 0x8a9   : > { %v3259_v9 = vadd.f32 %v1054_v6, %v1004_v5 }
 0x8aa   : > { %v2606_v10 = vpop.f32.mrf.mxu1 }
 0x8ab   : > { %v1129_v12 = vmul.f32 %v3259_v9, %v3259_v9  ;;  %2608 = vmatpush3.msra.mxu0 %v3259_v9 }
 0x8ac   : > { %2609 = vmatprep.subr.mxu0 %v2946_v0 }
 0x8ad   : > { %2610 = vmatpush3.msra.mxu0 %v3257_v7  ;;  %2615 = vmatpush3.msra.mxu1 %v1129_v12 }
 0x8ae   : > { %2612 = vmatmul.mubr.msk.f32.vlgmr.msra.gmra.mxu0 %vm386_vm3, %v2949_v17  ;;  %2616 = vmatprep.subr.mxu1 %v2946_v0 }
 0x8af   : > { %2617 = vmatpush3.msra.mxu1 %v1128_v13  ;;  %2621 = vmatprep.subr.mxu0 %v2946_v0 }
 0x8b0   : > { %2619 = vmatmul.mubr.msk.f32.vlgmr.msra.gmra.mxu1 %vm386_vm3, %v2949_v17  ;;  %2628 = vmatprep.subr.mxu1 %v2946_v0 }
 0x8b1   : > { %2625 = vmatprep.mubr.msk.f32.mxu0 %vm2947_vm0, %v2946_v0  ;;  %2632 = vmatprep.mubr.msk.f32.mxu1 %vm2947_vm0, %v2946_v0 }
 0x96e   : > { %v1124_v15 = vpop.f32.mrf.mxu0 }
 0x96f   : > { %1200 = vadd.xlane.f32.xlu1 %v1124_v15 }
 0x970   : > { %v2613_v16 = vpop.f32.mrf.mxu0  ;;  %v1196_v18 = vpop.f32.mrf.mxu1 }
 0x971   : > { %1210 = vadd.xlane.f32.xlu0 %v1196_v18 }
 0x972   : > { %v2620_v20 = vpop.f32.mrf.mxu1 }
 0x9f8   : > { %v1201_v21 = vpop.xlane.xlu1 %1200 }
 0x9f9   : > { %v1202_v23 = vrot.slane %v1201_v21, 4 }
 0x9fa   : > { %v1211_v24 = vpop.xlane.xlu0 %1210 }
 0x9fb   : > { %v1203_v25 = vadd.f32 %v1202_v23, %v1201_v21  ;;  %v1212_v26 = vrot.slane %v1211_v24, 4 }
 0x9fd   : > { %v1204_v27 = vrot.slane %v1203_v25, 2  ;;  %v1213_v28 = vadd.f32 %v1212_v26, %v1211_v24 }
 0x9ff   : > { %v1214_v30 = vrot.slane %v1213_v28, 2  ;;  %v1205_v31 = vadd.f32 %v1204_v27, %v1203_v25 }
 0xa01   : > { %v1206_v32 = vrot.slane %v1205_v31, 1  ;;  %v1215_v33 = vadd.f32 %v1214_v30, %v1213_v28 }
 0xa03   : > { %v1207_v34 = vadd.f32 %v1206_v32, %v1205_v31  ;;  %v1216_v35 = vrot.slane %v1215_v33, 1 }
 0xa05   : > { %2693 = vpush %v1207_v34  ;;  %v1217_v1 = vadd.f32 %v1216_v35, %v1215_v33 }
 0xa07   : > { %2695 = vpush %v1217_v1 }
 0xa36   : > { %s2694_s14 = spop %2693 }
 0xa37   : > { %s1209_s16 = smul.f32 6.1035156e-05, %s2694_s14 }
 0xa38   : > { %s2696_s18 = spop %2695 }
 0xa39   : > { %s1220_s19 = smul.f32 %s1209_s16, %s1209_s16  ;;  %v1230_v42 = vstv %s1209_s16 }
 0xa3a   : > { %s1219_s20 = smul.f32 6.1035156e-05, %s2696_s18 }
 0xa3c   : > { %s1221_s22 = ssub.f32 %s1219_s20, %s1220_s19 }
 0xa3e   : > { %s1222_s23 = smax.f32 %s2951_s17, %s1221_s22 }
 0xa3f   : > { %s1223_s29 = sadd.f32 1e-12, %s1222_s23 }
 0xa41   : > { %v1224_v3 = vstv %s1223_s29 }
 0xa42   : > { %2844 = vrsqrt.f32 %v1224_v3 }
 0xa4f   : > { %v2845_v36 = vpop.eup %2844 }
 0xa50   : > { %2697 = vpush %v2845_v36 }
 0xa81   : > { %s2698_s9 = spop %2697 }
 0xa82   : > { %v1227_v38 = vstv %s2698_s9 }
 0xa83   : > { %v1228_v39 = vmul.f32 %v3231_v46, %v1227_v38  ;;  %v1229_v41 = vmul.f32 %v3236_v47, %v1227_v38 }
 0xa85   : > { %v1231_v43 = vmul.f32 %v1230_v42, %v1228_v39  ;;  %v1232_v44 = vmul.f32 %v1230_v42, %v1229_v41 }
 0xa87   : > { %1237 = vrot.lane.b32.xlu1 %v1232_v44, %s2953_s21  ;;  %1235 = vrot.lane.b32.xlu0 %v1231_v43, %s2953_s21 }
 0xa8b   : > { %1250 = vperm.xlu1 %2800, %v1229_v41  }
 0xa8f   : > { %1245 = vperm.xlu1 %2800, %v1228_v39  }
 0xa93   : > { %2802 = vset.pattern.permute.xlu1 %v2952_v40 }
 0xaf9   : > { %v1238_v45 = vpop.permute.xlu1 %1237  ;;  %v1236_v49 = vpop.permute.xlu0 %1235 }
 0xafa   : > { %v1242_v50 = vsub.f32 %v3236_v47, %v1238_v45  ;;  %v1241_v56 = vsub.f32 %v3231_v46, %v1236_v49 }
 0xafc   : > { %1262 = vperm.xlu0 %2801, %v1242_v50   ;;  %1257 = vperm.xlu1 %2802, %v1241_v56  }
 0xb00   : > { %1329 = vrot.lane.b32.xlu0 %v3231_v46, %s2957_s15  ;;  %1331 = vrot.lane.b32.xlu1 %v3236_v47, %s2957_s15  ;;  %s2961_s15 = smov 2  }
 0xb01   : > { %2804 = vset.pattern.permute.xlu0 %v2955_v53  ;;  %2803 = vset.pattern.permute.xlu1 %v2956_v54 }
 0xb04   : > { %1291 = vperm.xlu0 %2804, %v3236_v47   ;;  %1281 = vperm.xlu1 %2803, %v3236_v47  }
 0xb06   : > { %v1251_v57 = vpop.permute.xlu1 %1250 }
 0xb07   : > { %v1254_v60 = vmul.f32 %v1251_v57, %v3259_v9 }
 0xb08   : > { %1277 = vperm.xlu1 %2803, %v3231_v46   ;;  %2806 = vset.pattern.permute.xlu0 %v2958_v55 }
 0xb09   : > { %1312 = vperm.xlu0 %2806, %v3236_v47  }
 0xb0a   : > { %v1246_v59 = vpop.permute.xlu1 %1245 }
 0xb0b   : > { %v1253_v61 = vmul.f32 %v1246_v59, %v3257_v7 }
 0xb0c   : > { %2805 = vset.pattern.permute.xlu1 %v2955_v53 }
 0xb0d   : > { %1287 = vperm.xlu1 %2805, %v3231_v46   ;;  %1324 = vperm.xlu0 %2806, %v3137_v52  }
 0xb11   : > { %2807 = vset.pattern.permute.xlu1 %v2958_v55  ;;  %1320 = vperm.xlu0 %2806, %v3134_v51  }
 0xb12   : > { %1308 = vperm.xlu1 %2807, %v3231_v46  }
 0xb77   : > { %v1258_v62 = vpop.permute.xlu1 %1257  ;;  %v1263_v4 = vpop.permute.xlu0 %1262 }
 0xb78   : > { %v1265_v63 = vadd.f32 %v1258_v62, %v1253_v61  ;;  %v1266_v5 = vadd.f32 %v1263_v4, %v1254_v60 }
 0xb7a   : > { %1267 = vrot.lane.b32.xlu0 %v1265_v63, %s2961_s15  ;;  %1269 = vrot.lane.b32.xlu1 %v1266_v5, %s2961_s15 }
 0xb7b   : > { %v1330_v6 = vpop.permute.xlu0 %1329  ;;  %v1332_v12 = vpop.permute.xlu1 %1331 }
 0xb7c   : > { %v1335_v10 = vmul.f32 %v1330_v6, %v3134_v51  ;;  %v1336_v15 = vmul.f32 %v1332_v12, %v3137_v52 }
 0xb7e   : > { %v1337_v13 = vadd.f32 %v1335_v10, %v3169_v11  ;;  %1300 = vrot.lane.b32.xlu1 %v1266_v5, %s2962_s13  ;;  %v1338_v7 = vadd.f32 %v1336_v15, %v3164_v8 }
 0xb7f   : > { %v1282_v9 = vpop.permute.xlu1 %1281  ;;  %v1292_v16 = vpop.permute.xlu0 %1291 }
 0xb80   : > { %1341 = vperm.xlu0 %2806, %v1337_v13   ;;  %v1295_v3 = vmul.f32 %v1292_v16, %v1266_v5 }
 0xb82   : > { %1298 = vrot.lane.b32.xlu1 %v1265_v63, %s2962_s13 }
 0xb83   : > { %v1278_v18 = vpop.permute.xlu1 %1277 }
 0xb84   : > { %2809 = vset.pattern.permute.xlu0 %v2959_v19  ;;  %v1313_v51 = vpop.permute.xlu0 %1312 }
 0xb86   : > { %1346 = vperm.xlu1 %2807, %v1338_v7  }
 0xb88   : > { %v1288_v20 = vpop.permute.xlu1 %1287  ;;  %v1325_v21 = vpop.permute.xlu0 %1324 }
 0xb89   : > { %v1294_v34 = vmul.f32 %v1288_v20, %v1265_v63 }
 0xb8a   : > { %2808 = vset.pattern.permute.xlu1 %v2959_v19 }
 0xb8c   : > { %v1321_v24 = vpop.permute.xlu0 %1320 }
 0xb8d   : > { %v1309_v23 = vpop.permute.xlu1 %1308 }
 0xbec   : > { %v1270_v25 = vpop.permute.xlu1 %1269  ;;  %v1268_v52 = vpop.permute.xlu0 %1267 }
 0xbed   : > { %v1274_v27 = vsel %vm1271_vm6, %v1268_v52, 0.0  ;;  %v1275_v28 = vsel %vm1271_vm6, %v1270_v25, 0.0 }
 0xbee   : > { %v1284_v30 = vmul.f32 %v1278_v18, %v1274_v27  ;;  %v1285_v35 = vmul.f32 %v1282_v9, %v1275_v28 }
 0xbf0   : > { %v1301_v26 = vpop.permute.xlu1 %1300  ;;  %v1296_v36 = vadd.f32 %v1294_v34, %v1284_v30  ;;  %v1297_v39 = vadd.f32 %v1295_v3, %v1285_v35  ;;  %v2835_v35 = vld [vmem:[%s3607_s4 + $0xc] sm:$0xff]  }
 0xbf1   : > { %v1306_v32 = vsel %vm1302_vm7, %v1301_v26, 0.0 }
 0xbf2   : > { %v1316_v38 = vmul.f32 %v1313_v51, %v1306_v32 }
 0xbf4   : > { %v1299_v31 = vpop.permute.xlu1 %1298  ;;  %v1318_v42 = vadd.f32 %v1316_v38, %v1297_v39 }
 0xbf5   : > { %v1305_v33 = vsel %vm1302_vm7, %v1299_v31, 0.0 }
 0xbf6   : > { %v1315_v1 = vmul.f32 %v1309_v23, %v1305_v33  ;;  %v1328_v45 = vmul.f32 %v1325_v21, %v1318_v42 }
 0xbf8   : > { %v1317_v41 = vadd.f32 %v1315_v1, %v1296_v36  ;;  %v2468_v1 = vld [vmem:[%s3608_s5 + $0x18] sm:$0xff] }
 0xbfa   : > { %v1327_v43 = vmul.f32 %v1321_v24, %v1317_v41 }
 0xbfb   : > { %v1342_v44 = vpop.permute.xlu0 %1341 }
 0xbfc   : > { %v3316_v50 = vadd.f32 %v1342_v44, %v1327_v43  ;;  %v2836_v44 = vld [vmem:[%s3607_s4 + $0x14] ss:$0 sps:$4 sm:$0xff]  }
 0xbfe   : > { %v1421_v59 = vmul.f32 %v3316_v50, %v3316_v50 }
 0xc01   : > { %v1347_v49 = vpop.permute.xlu1 %1346 }
 0xc02   : > { %v3318_v56 = vadd.f32 %v1347_v49, %v1328_v45  ;;  %v3365_v45 = vld [vmem:[%s3606_s3 + $0x28] sm:$0xff]  ;;  %v3371_v49 = vld [vmem:[%s3606_s3 + $0x20] sm:$0xff] }
 0xc04   : > { %v1422_v57 = vmul.f32 %v3318_v56, %v3318_v56  ;;  %2622 = vmatpush3.msra.mxu0 %v3318_v56 }
 0xc05   : > { %2623 = vmatprep.subr.mxu0 %v2946_v0 }
 0xc06   : > { %2624 = vmatpush3.msra.mxu0 %v3316_v50  ;;  %2629 = vmatpush3.msra.mxu1 %v1422_v57 }
 0xc07   : > { %2626 = vmatmul.mubr.msk.f32.vlgmr.msra.gmra.mxu0 %vm386_vm3, %v2949_v17  ;;  %2630 = vmatprep.subr.mxu1 %v2946_v0 }
 0xc08   : > { %2631 = vmatpush3.msra.mxu1 %v1421_v59  ;;  %2637 = vmatprep.mubr.msk.bf16.mxu0 %vm386_vm3, %v2835_v35 }
 0xc09   : > { %2633 = vmatmul.mubr.msk.f32.vlgmr.msra.gmra.mxu1 %vm386_vm3, %v2949_v17  ;;  %2641 = vmatprep.subr.bf16.mxu1 %v2946_v0 }
 0xc0a   : > { %2643 = vmatprep.mubr.msk.bf16.mxu1 %vm2947_vm0, %v2946_v0 }
 0xcc7   : > { %v1417_v60 = vpop.f32.mrf.mxu0 }
 0xcc8   : > { %1493 = vadd.xlane.f32.xlu1 %v1417_v60 }
 0xcc9   : > { %v2627_v61 = vpop.f32.mrf.mxu0  ;;  %v1489_v62 = vpop.f32.mrf.mxu1 }
 0xcca   : > { %1503 = vadd.xlane.f32.xlu0 %v1489_v62 }
 0xccb   : > { %v2634_v4 = vpop.f32.mrf.mxu1 }
 0xd51   : > { %v1494_v63 = vpop.xlane.xlu1 %1493 }
 0xd52   : > { %v1495_v5 = vrot.slane %v1494_v63, 4 }
 0xd53   : > { %v1504_v6 = vpop.xlane.xlu0 %1503 }
 0xd54   : > { %v1496_v10 = vadd.f32 %v1495_v5, %v1494_v63  ;;  %v1505_v12 = vrot.slane %v1504_v6, 4  ;;  %v2837_v63 = vld [vmem:[%s3605_s2 + $0x10] sm:$0xff]  }
 0xd56   : > { %v1497_v13 = vrot.slane %v1496_v10, 2  ;;  %v1506_v15 = vadd.f32 %v1505_v12, %v1504_v6 }
 0xd58   : > { %v1507_v7 = vrot.slane %v1506_v15, 2  ;;  %v1498_v9 = vadd.f32 %v1497_v13, %v1496_v10 }
 0xd5a   : > { %v1499_v16 = vrot.slane %v1498_v9, 1  ;;  %v1508_v18 = vadd.f32 %v1507_v7, %v1506_v15 }
 0xd5c   : > { %v1500_v51 = vadd.f32 %v1499_v16, %v1498_v9  ;;  %v1509_v20 = vrot.slane %v1508_v18, 1 }
 0xd5e   : > { %2699 = vpush %v1500_v51  ;;  %v1510_v21 = vadd.f32 %v1509_v20, %v1508_v18 }
 0xd60   : > { %2701 = vpush %v1510_v21 }
 0xd8f   : > { %s2700_s14 = spop %2699 }
 0xd90   : > { %s1502_s16 = smul.f32 6.1035156e-05, %s2700_s14 }
 0xd91   : > { %s2702_s18 = spop %2701 }
 0xd92   : > { %s1513_s19 = smul.f32 %s1502_s16, %s1502_s16  ;;  %v1523_v27 = vstv %s1502_s16 }
 0xd93   : > { %s1512_s20 = smul.f32 6.1035156e-05, %s2702_s18 }
 0xd95   : > { %s1514_s22 = ssub.f32 %s1512_s20, %s1513_s19 }
 0xd97   : > { %s1515_s23 = smax.f32 %s2951_s17, %s1514_s22 }
 0xd98   : > { %s1516_s29 = sadd.f32 1e-12, %s1515_s23 }
 0xd9a   : > { %v1517_v23 = vstv %s1516_s29 }
 0xd9b   : > { %2846 = vrsqrt.f32 %v1517_v23 }
 0xda8   : > { %v2847_v24 = vpop.eup %2846 }
 0xda9   : > { %2703 = vpush %v2847_v24 }
 0xdda   : > { %s2704_s9 = spop %2703 }
 0xddb   : > { %v1520_v25 = vstv %s2704_s9  ;;  %s2963_s9 = smov 4  }
 0xddc   : > { %v1521_v52 = vmul.f32 %v3231_v46, %v1520_v25  ;;  %v1522_v26 = vmul.f32 %v3236_v47, %v1520_v25 }
 0xdde   : > { %v1524_v28 = vmul.f32 %v1523_v27, %v1521_v52  ;;  %v1525_v30 = vmul.f32 %v1523_v27, %v1522_v26 }
 0xde0   : > { %1530 = vrot.lane.b32.xlu1 %v1525_v30, %s2953_s21  ;;  %1528 = vrot.lane.b32.xlu0 %v1524_v28, %s2953_s21 }
 0xde4   : > { %1538 = vperm.xlu1 %2808, %v1521_v52   ;;  %1543 = vperm.xlu0 %2809, %v1522_v26  }
 0xde8   : > { %2810 = vset.pattern.permute.xlu1 %v2960_v29  ;;  %2811 = vset.pattern.permute.xlu0 %v2956_v54 }
 0xde9   : > { %1563 = vperm.xlu0 %2811, %v2468_v1  }
 0xded   : > { %2813 = vset.pattern.permute.xlu0 %v2950_v37 }
 0xe52   : > { %v1529_v31 = vpop.permute.xlu0 %1528  ;;  %v1531_v33 = vpop.permute.xlu1 %1530 }
 0xe53   : > { %v1534_v32 = vsub.f32 %v3231_v46, %v1529_v31  ;;  %v1535_v34 = vsub.f32 %v3236_v47, %v1531_v33 }
 0xe55   : > { %1550 = vperm.xlu1 %2810, %v1534_v32  }
 0xe59   : > { %1555 = vperm.xlu1 %2810, %v1535_v34  }
 0xe5d   : > { %2812 = vset.pattern.permute.xlu1 %v2948_v2 }
 0xe5e   : > { %1663 = vperm.xlu1 %2812, %v3365_v45  }
 0xe5f   : > { %v1539_v46 = vpop.permute.xlu1 %1538  ;;  %v1544_v3 = vpop.permute.xlu0 %1543 }
 0xe60   : > { %v1546_v47 = vmul.f32 %v1539_v46, %v3316_v50  ;;  %v1547_v38 = vmul.f32 %v1544_v3, %v3318_v56 }
 0xe62   : > { %1658 = vperm.xlu1 %2812, %v3371_v49  }
 0xe64   : > { %v1564_v56 = vpop.permute.xlu0 %1563 }
 0xe66   : > { %2814 = vset.pattern.permute.xlu1 %v2950_v37 }
 0xed0   : > { %v1551_v36 = vpop.permute.xlu1 %1550 }
 0xed1   : > { %v1558_v41 = vadd.f32 %v1551_v36, %v1546_v47 }
 0xed4   : > { %v1556_v39 = vpop.permute.xlu1 %1555 }
 0xed5   : > { %v1559_v42 = vadd.f32 %v1556_v39, %v1547_v38 }
 0xed7   : > { %v1560_v43 = vpack.c.bf16 %v1559_v42, %v1558_v41 }
 0xed9   : > { %2635 = vmatprep.subr.bf16.mxu0 %v1560_v43  ;;  %v1664_v37 = vpop.permute.xlu1 %1663 }
 0xeda   : > { %2636 = vmatpush3.bf16.msra.mxu0 %v1560_v43 }
 0xedb   : > { %2647 = vmatprep.subr.mxu0 %v2946_v0 }
 0xedd   : > { %2638 = vmatmul.mubr.msk.bf16.vlgmr.msra.gmra.mxu0 %vm386_vm3, %v2836_v44  ;;  %v1659_v5 = vpop.permute.xlu1 %1658 }
 0xede   : > { %2651 = vmatprep.mubr.msk.f32.mxu0 %vm2947_vm0, %v2946_v0 }
 0xf9d   : > { %v3375_v50 = vpop.f32.mrf.mxu0 }
 0xf9f   : > { %v1624_v57 = vpop.f32.mrf.mxu0 }
 0xfa0   : > { %v1625_v59 = vadd.f32 %v1624_v57, %v1564_v56 }
 0xfa1   : > { %v2640_v60 = vpop.f32.mrf.mxu0 }
 0xfa2   : > { %v3378_v61 = vadd.f32 %v1625_v59, %v3245_v58 }
 0xfa3   : > { %v3412_v16 = vpop.f32.mrf.mxu0 }
 0xfa4   : > { %v1655_v62 = vpack.c.bf16 %v3378_v61, %v3378_v61 }
 0xfa6   : > { %v1675_v4 = vsel %vm341_vm1, %v1655_v62, 0 }
 0xfa7   : > { %2642 = vmatpush3.bf16.msra.mxu1 %v1675_v4 }
 0xfa8   : > { %2654 = vmatprep.subr.mxu1 %v2946_v0 }
 0xfaa   : > { %2644 = vmatmul.mubr.msk.bf16.vlgmr.msra.gmra.mxu1 %vm337_vm2, %v2837_v63 }
 0xfab   : > { %2658 = vmatprep.mubr.msk.f32.mxu1 %vm2947_vm0, %v2946_v0 }
0x106a   : > { %v1711_v58 = vpop.f32.mrf.mxu1 }
0x106b   : > { %v3390_v12 = vadd.f32 %v1711_v58, %v1659_v5 }
0x106c   : > { %v2645_v6 = vpop.f32.mrf.mxu1 }
0x106d   : > { %v1788_v9 = vmul.f32 %v3390_v12, %v3390_v12 }
0x106e   : > { %v1714_v10 = vpop.f32.mrf.mxu1 }
0x106f   : > { %v3392_v13 = vadd.f32 %v1714_v10, %v1664_v37 }
0x1070   : > { %v2646_v15 = vpop.f32.mrf.mxu1 }
0x1071   : > { %v1789_v7 = vmul.f32 %v3392_v13, %v3392_v13  ;;  %2648 = vmatpush3.msra.mxu0 %v3392_v13 }
0x1072   : > { %2649 = vmatprep.subr.mxu0 %v2946_v0 }
0x1073   : > { %2650 = vmatpush3.msra.mxu0 %v3390_v12  ;;  %2655 = vmatpush3.msra.mxu1 %v1789_v7 }
0x1074   : > { %2652 = vmatmul.mubr.msk.f32.vlgmr.msra.gmra.mxu0 %vm386_vm3, %v2949_v17  ;;  %2656 = vmatprep.subr.mxu1 %v2946_v0 }
0x1075   : > { %2657 = vmatpush3.msra.mxu1 %v1788_v9  ;;  %2661 = vmatprep.subr.mxu0 %v2946_v0 }
0x1076   : > { %2659 = vmatmul.mubr.msk.f32.vlgmr.msra.gmra.mxu1 %vm386_vm3, %v2949_v17  ;;  %2668 = vmatprep.subr.mxu1 %v2946_v0 }
0x1077   : > { %2665 = vmatprep.mubr.msk.f32.mxu0 %vm2947_vm0, %v2946_v0  ;;  %2672 = vmatprep.mubr.msk.f32.mxu1 %vm2947_vm0, %v2946_v0 }
0x1134   : > { %v1784_v18 = vpop.f32.mrf.mxu0 }
0x1135   : > { %1860 = vadd.xlane.f32.xlu0 %v1784_v18 }
0x1136   : > { %v1856_v51 = vpop.f32.mrf.mxu1  ;;  %v2653_v20 = vpop.f32.mrf.mxu0 }
0x1137   : > { %1870 = vadd.xlane.f32.xlu1 %v1856_v51 }
0x1138   : > { %v2660_v21 = vpop.f32.mrf.mxu1 }
0x11be   : > { %v1861_v23 = vpop.xlane.xlu0 %1860 }
0x11bf   : > { %v1862_v24 = vrot.slane %v1861_v23, 4 }
0x11c0   : > { %v1871_v25 = vpop.xlane.xlu1 %1870 }
0x11c1   : > { %v1863_v52 = vadd.f32 %v1862_v24, %v1861_v23  ;;  %v1872_v26 = vrot.slane %v1871_v25, 4 }
0x11c3   : > { %v1864_v27 = vrot.slane %v1863_v52, 2  ;;  %v1873_v28 = vadd.f32 %v1872_v26, %v1871_v25 }
0x11c5   : > { %v1874_v30 = vrot.slane %v1873_v28, 2  ;;  %v1865_v31 = vadd.f32 %v1864_v27, %v1863_v52 }
0x11c7   : > { %v1866_v32 = vrot.slane %v1865_v31, 1  ;;  %v1875_v33 = vadd.f32 %v1874_v30, %v1873_v28 }
0x11c9   : > { %v1867_v34 = vadd.f32 %v1866_v32, %v1865_v31  ;;  %v1876_v35 = vrot.slane %v1875_v33, 1 }
0x11cb   : > { %2705 = vpush %v1867_v34  ;;  %v1877_v1 = vadd.f32 %v1876_v35, %v1875_v33 }
0x11cd   : > { %2707 = vpush %v1877_v1 }
0x11fc   : > { %s2706_s13 = spop %2705 }
0x11fd   : > { %s1869_s14 = smul.f32 6.1035156e-05, %s2706_s13 }
0x11fe   : > { %s2708_s16 = spop %2707 }
0x11ff   : > { %s1880_s18 = smul.f32 %s1869_s14, %s1869_s14  ;;  %v1890_v39 = vstv %s1869_s14 }
0x1200   : > { %s1879_s19 = smul.f32 6.1035156e-05, %s2708_s16 }
0x1202   : > { %s1881_s20 = ssub.f32 %s1879_s19, %s1880_s18 }
0x1204   : > { %s1882_s22 = smax.f32 %s2951_s17, %s1881_s20 }
0x1205   : > { %s1883_s23 = sadd.f32 1e-12, %s1882_s22 }
0x1207   : > { %v1884_v46 = vstv %s1883_s23 }
0x1208   : > { %2848 = vrsqrt.f32 %v1884_v46 }
0x1215   : > { %v2849_v3 = vpop.eup %2848 }
0x1216   : > { %2709 = vpush %v2849_v3 }
0x1247   : > { %s2710_s29 = spop %2709 }
0x1248   : > { %v1887_v36 = vstv %s2710_s29 }
0x1249   : > { %v1888_v47 = vmul.f32 %v3371_v49, %v1887_v36  ;;  %v1889_v38 = vmul.f32 %v3365_v45, %v1887_v36 }
0x124b   : > { %v1891_v41 = vmul.f32 %v1890_v39, %v1888_v47  ;;  %v1892_v42 = vmul.f32 %v1890_v39, %v1889_v38 }
0x124d   : > { %1897 = vrot.lane.b32.xlu0 %v1892_v42, %s2953_s21  ;;  %1895 = vrot.lane.b32.xlu1 %v1891_v41, %s2953_s21 }
0x1251   : > { %1910 = vperm.xlu0 %2813, %v1889_v38   ;;  %1905 = vperm.xlu1 %2814, %v1888_v47  }
0x1255   : > { %2816 = vset.pattern.permute.xlu0 %v2952_v40  ;;  %2815 = vset.pattern.permute.xlu1 %v2952_v40  ;;  %v2852_v40 = vld [vmem:[%s3129_s8 + $0x8] sm:$0xff] }
0x12bf   : > { %v1898_v43 = vpop.permute.xlu0 %1897  ;;  %v1896_v44 = vpop.permute.xlu1 %1895 }
0x12c0   : > { %v1902_v56 = vsub.f32 %v3365_v45, %v1898_v43  ;;  %v1901_v57 = vsub.f32 %v3371_v49, %v1896_v44 }
0x12c2   : > { %1922 = vperm.xlu1 %2815, %v1902_v56   ;;  %1917 = vperm.xlu0 %2816, %v1901_v57  }
0x12c6   : > { %1991 = vrot.lane.b32.xlu1 %v3365_v45, %s2953_s21  ;;  %2817 = vset.pattern.permute.xlu0 %v2956_v54 }
0x12c7   : > { %1941 = vperm.xlu0 %2817, %v3365_v45   ;;  %2818 = vset.pattern.permute.xlu1 %v2955_v53 }
0x12ca   : > { %1989 = vrot.lane.b32.xlu1 %v3371_v49, %s2953_s21 }
0x12cb   : > { %2820 = vset.pattern.permute.xlu0 %v2955_v53  ;;  %v2853_v53 = vld [vmem:[%s3129_s8] sm:$0xff]  ;;  %s2964_s8 = smov 124  }
0x12cc   : > { %1947 = vperm.xlu0 %2820, %v3371_v49   ;;  %v1911_v59 = vpop.permute.xlu0 %1910  ;;  %v1906_v60 = vpop.permute.xlu1 %1905 }
0x12cd   : > { %v1914_v62 = vmul.f32 %v1911_v59, %v3392_v13  ;;  %v1913_v58 = vmul.f32 %v1906_v60, %v3390_v12 }
0x12ce   : > { %1951 = vperm.xlu1 %2818, %v3365_v45  }
0x12d0   : > { %2822 = vset.pattern.permute.xlu0 %v2958_v55 }
0x12d1   : > { %1968 = vperm.xlu0 %2822, %v3371_v49  }
0x12d2   : > { %2819 = vset.pattern.permute.xlu1 %v2956_v54 }
0x12d3   : > { %1937 = vperm.xlu1 %2819, %v3371_v49  }
0x12d5   : > { %2823 = vset.pattern.permute.xlu0 %v2948_v2 }
0x12d6   : > { %1984 = vperm.xlu0 %2823, %v2852_v40  }
0x12d7   : > { %2821 = vset.pattern.permute.xlu1 %v2958_v55 }
0x12d8   : > { %1972 = vperm.xlu1 %2821, %v3365_v45  }
0x12dc   : > { %2824 = vset.pattern.permute.xlu1 %v2948_v2 }
0x12dd   : > { %1980 = vperm.xlu1 %2824, %v2853_v53  }
0x133d   : > { %v1923_v4 = vpop.permute.xlu1 %1922  ;;  %v1918_v37 = vpop.permute.xlu0 %1917 }
0x133e   : > { %v1926_v63 = vadd.f32 %v1923_v4, %v1914_v62  ;;  %v1925_v6 = vadd.f32 %v1918_v37, %v1913_v58 }
0x1340   : > { %1929 = vrot.lane.b32.xlu1 %v1926_v63, %s2963_s9 }
0x1341   : > { %v1992_v5 = vpop.permute.xlu1 %1991 }
0x1342   : > { %v1996_v55 = vmul.f32 %v2852_v40, %v1992_v5  ;;  %v1942_v18 = vpop.permute.xlu0 %1941 }
0x1344   : > { %v1998_v10 = vadd.f32 %v1996_v55, %v3164_v8  ;;  %1927 = vrot.lane.b32.xlu1 %v1925_v6, %s2963_s9 }
0x1345   : > { %v1990_v2 = vpop.permute.xlu1 %1989 }
0x1346   : > { %2006 = vperm.xlu0 %2823, %v1998_v10   ;;  %v1995_v15 = vmul.f32 %v2853_v53, %v1990_v2 }
0x1347   : > { %v1948_v8 = vpop.permute.xlu0 %1947 }
0x1348   : > { %1960 = vrot.lane.b32.xlu1 %v1926_v63, %s2964_s8  ;;  %v1997_v13 = vadd.f32 %v1995_v15, %v3169_v11  ;;  %v1954_v46 = vmul.f32 %v1948_v8, %v1925_v6 }
0x1349   : > { %v1952_v12 = vpop.permute.xlu1 %1951 }
0x134a   : > { %2825 = vset.pattern.permute.xlu0 %v2959_v19  ;;  %v1955_v52 = vmul.f32 %v1952_v12, %v1926_v63 }
0x134c   : > { %1958 = vrot.lane.b32.xlu1 %v1925_v6, %s2964_s8  ;;  %v1969_v23 = vpop.permute.xlu0 %1968  ;;  %s3510_s8 = sand.u32 1, %s2936_s25  }
0x134d   : > { %s2305_s9 = scalar_lea.sflag [#allocation3], %s3510_s8 }
0x134e   : > { %v1938_v7 = vpop.permute.xlu1 %1937 }
0x1350   : > { %2001 = vperm.xlu1 %2824, %v1997_v13  }
0x1351   : > { %v1985_v27 = vpop.permute.xlu0 %1984 }
0x1353   : > { %v1973_v9 = vpop.permute.xlu1 %1972 }
0x1354   : > { %2826 = vset.pattern.permute.xlu1 %v2959_v19 }
0x1358   : > { %v1981_v51 = vpop.permute.xlu1 %1980 }
0x13b2   : > { %v1930_v20 = vpop.permute.xlu1 %1929 }
0x13b3   : > { %v1935_v21 = vsel %vm1931_vm8, %v1930_v20, 0.0 }
0x13b4   : > { %v1945_v25 = vmul.f32 %v1942_v18, %v1935_v21 }
0x13b6   : > { %v1928_v24 = vpop.permute.xlu1 %1927  ;;  %v1957_v19 = vadd.f32 %v1955_v52, %v1945_v25  ;;  %v2469_v25 = vld [vmem:[%s3608_s5 + $0x20] sm:$0xff]  ;;  %v2489_v52 = vld [vmem:[%s3608_s5 + $0x38] sm:$0xff] }
0x13b7   : > { %v1934_v30 = vsel %vm1931_vm8, %v1928_v24, 0.0  ;;  %v2838_v24 = vld [vmem:[%s3607_s4 + $0x18] sm:$0xff]  }
0x13b8   : > { %v1944_v34 = vmul.f32 %v1938_v7, %v1934_v30 }
0x13ba   : > { %v1961_v11 = vpop.permute.xlu1 %1960  ;;  %v1956_v47 = vadd.f32 %v1954_v46, %v1944_v34 }
0x13bb   : > { %v1966_v26 = vsel %vm1962_vm9, %v1961_v11, 0.0  ;;  %v2490_v11 = vld [vmem:[%s3608_s5 + $0x40] sm:$0xff] }
0x13bc   : > { %v1976_v28 = vmul.f32 %v1973_v9, %v1966_v26 }
0x13be   : > { %v1978_v31 = vadd.f32 %v1976_v28, %v1957_v19  ;;  %v1959_v32 = vpop.permute.xlu1 %1958 }
0x13bf   : > { %v1965_v33 = vsel %vm1962_vm9, %v1959_v32, 0.0 }
0x13c0   : > { %v1988_v35 = vmul.f32 %v1985_v27, %v1978_v31  ;;  %v1975_v3 = vmul.f32 %v1969_v23, %v1965_v33 }
0x13c1   : > { %v2007_v1 = vpop.permute.xlu0 %2006 }
0x13c2   : > { %v3451_v36 = vadd.f32 %v2007_v1, %v1988_v35  ;;  %v1977_v38 = vadd.f32 %v1975_v3, %v1956_v47  ;;  %v2839_v35 = vld [vmem:[%s3607_s4 + $0x20] ss:$0 sps:$4 sm:$0xff]  }
0x13c4   : > { %v2082_v22 = vmul.f32 %v3451_v36, %v3451_v36  ;;  %2662 = vmatpush3.msra.mxu0 %v3451_v36  ;;  %v1987_v39 = vmul.f32 %v1981_v51, %v1977_v38 }
0x13c5   : > { %2663 = vmatprep.subr.mxu0 %v2946_v0 }
0x13c6   : > { %2669 = vmatpush3.msra.mxu1 %v2082_v22 }
0x13c7   : > { %2670 = vmatprep.subr.mxu1 %v2946_v0 }
0x13cb   : > { %v2002_v41 = vpop.permute.xlu1 %2001 }
0x13cc   : > { %v3458_v42 = vadd.f32 %v2002_v41, %v1987_v39 }
0x13ce   : > { %v2081_v43 = vmul.f32 %v3458_v42, %v3458_v42  ;;  %2664 = vmatpush3.msra.mxu0 %v3458_v42 }
0x13cf   : > { %2666 = vmatmul.mubr.msk.f32.vlgmr.msra.gmra.mxu0 %vm386_vm3, %v2949_v17 }
0x13d0   : > { %2671 = vmatpush3.msra.mxu1 %v2081_v43  ;;  %2677 = vmatprep.mubr.msk.bf16.mxu0 %vm386_vm3, %v2838_v24 }
0x13d1   : > { %2673 = vmatmul.mubr.msk.f32.vlgmr.msra.gmra.mxu1 %vm386_vm3, %v2949_v17 }
0x148f   : > { %v2077_v44 = vpop.f32.mrf.mxu0 }
0x1490   : > { %2153 = vadd.xlane.f32.xlu0 %v2077_v44 }
0x1491   : > { %v2149_v56 = vpop.f32.mrf.mxu1  ;;  %v2667_v0 = vpop.f32.mrf.mxu0 }
0x1492   : > { %2163 = vadd.xlane.f32.xlu1 %v2149_v56 }
0x1493   : > { %v2674_v57 = vpop.f32.mrf.mxu1 }
0x1519   : > { %v2154_v40 = vpop.xlane.xlu0 %2153 }
0x151a   : > { %v2155_v53 = vrot.slane %v2154_v40, 4 }
0x151b   : > { %v2164_v59 = vpop.xlane.xlu1 %2163 }
0x151c   : > { %v2156_v60 = vadd.f32 %v2155_v53, %v2154_v40  ;;  %v2165_v62 = vrot.slane %v2164_v59, 4 }
0x151e   : > { %v2157_v4 = vrot.slane %v2156_v60, 2  ;;  %v2166_v63 = vadd.f32 %v2165_v62, %v2164_v59 }
0x1520   : > { %v2167_v37 = vrot.slane %v2166_v63, 2  ;;  %v2158_v58 = vadd.f32 %v2157_v4, %v2156_v60 }
0x1522   : > { %v2159_v5 = vrot.slane %v2158_v58, 1  ;;  %v2168_v6 = vadd.f32 %v2167_v37, %v2166_v63 }
0x1524   : > { %v2160_v55 = vadd.f32 %v2159_v5, %v2158_v58  ;;  %v2169_v10 = vrot.slane %v2168_v6, 1 }
0x1526   : > { %2711 = vpush %v2160_v55  ;;  %v2170_v17 = vadd.f32 %v2169_v10, %v2168_v6 }
0x1528   : > { %2713 = vpush %v2170_v17 }
0x1557   : > { %s2712_s15 = spop %2711 }
0x1558   : > { %s2162_s13 = smul.f32 6.1035156e-05, %s2712_s15  ;;  %s2447_s15 = sshll.u32 %s3510_s8, 4 }
0x1559   : > { %s2714_s14 = spop %2713 }
0x155a   : > { %s2173_s16 = smul.f32 %s2162_s13, %s2162_s13  ;;  %v2183_v9 = vstv %s2162_s13  ;;  %s2446_s13 = sshll.u32 %s3510_s8, 3 }
0x155b   : > { %s2172_s18 = smul.f32 6.1035156e-05, %s2714_s14  ;;  %s2503_s14 = sshll.u32 %s3030_s28, 7 }
0x155d   : > { %s2174_s19 = ssub.f32 %s2172_s18, %s2173_s16  ;;  %s288_s16 = scalar_lea.vmem [#allocation2], %s2446_s13 }
0x155e   : > { %s2323_s18 = sshll.u32 %s288_s16, 4  ;;  %s3529_s18 = int_to_ptr.vmem [resolvable:$true] %s2323_s18 }
0x155f   : > { %s2175_s20 = smax.f32 %s2951_s17, %s2174_s19  ;;  %s3519_s19 = scalar_lea.vmem [#allocation4], %s2447_s15 }
0x1560   : > { %s2176_s22 = sadd.f32 1e-12, %s2175_s20  ;;  %s2336_s20 = sshll.u32 %s3519_s19, 4  ;;  %s3531_s20 = int_to_ptr.vmem [resolvable:$true] %s2336_s20 }
0x1561   : > { %s3527_s17 = scalar_lea.hbm %s3609_s6, %s2503_s14  ;;  %s2965_s15 = smov [#allocation2]  }
0x1562   : > { %v2177_v2 = vstv %s2176_s22  ;;  %s2858_s13 = sshll.u32 %s2965_s15, 4  ;;  %s2859_s13 = int_to_ptr.vmem [resolvable:$false] %s2858_s13 }
0x1563   : > { %2850 = vrsqrt.f32 %v2177_v2  ;;  %s2860_s14 = scalar_lea.vmem %s2859_s13, 256  ;;  %p2861_p0 = scmp.lt.s32.totalorder %s3529_s18, %s2859_s13 }
0x1570   : > { %v2851_v15 = vpop.eup %2850 }
0x1571   : > { %2715 = vpush %v2851_v15 }
0x15a2   : > { %s2716_s23 = spop %2715 }
0x15a3   : > { %v2180_v13 = vstv %s2716_s23 }
0x15a4   : > { %v2181_v12 = vmul.f32 %v3371_v49, %v2180_v13  ;;  %v2182_v7 = vmul.f32 %v3365_v45, %v2180_v13 }
0x15a6   : > { %v2184_v18 = vmul.f32 %v2183_v9, %v2181_v12  ;;  %v2185_v51 = vmul.f32 %v2183_v9, %v2182_v7 }
0x15a8   : > { %2190 = vrot.lane.b32.xlu1 %v2185_v51, %s2953_s21  ;;  %2188 = vrot.lane.b32.xlu0 %v2184_v18, %s2953_s21  ;;  %s2854_s21 = scalar_lea.vmem %s3529_s18, 128 }
0x15a9   : > { %p2855_p11 = scmp.ne.s32.totalorder %s3529_s18, %s2854_s21  ;;  %p2862_p1 = scmp.lt.s32.totalorder %s2860_s14, %s2854_s21 }
0x15ab   : > { %p2856_p12 = pnand %p2855_p11, %p3047_p5  ;;  %p2863_p2 = por %p2862_p1, %p2861_p0 }
0x15ac   : > { %2203 = vperm.xlu1 %2826, %v2182_v7   ;;  %2198 = vperm.xlu0 %2825, %v2181_v12  }
0x15ad   : > { %p2857_p13 = pneg %p2856_p12 }
0x15af   : > { %p2864_p3 = pnand %p2863_p2, %p2857_p13 }
0x15b0   : > { %2827 = vset.pattern.permute.xlu1 %v2960_v29  ;;  %2828 = vset.pattern.permute.xlu0 %v2960_v29  ;;  %v317_v29 = vld [vmem:[%s3608_s5 + $0x8] sm:$0xff] }
0x161a   : > { %v2191_v8 = vpop.permute.xlu1 %2190  ;;  %v2189_v20 = vpop.permute.xlu0 %2188 }
0x161b   : > { %v2195_v21 = vsub.f32 %v3365_v45, %v2191_v8  ;;  %v2194_v23 = vsub.f32 %v3371_v49, %v2189_v20  ;;  %v318_v45 = vld [vmem:[%s3608_s5 + $0x10] sm:$0xff]  ;;  %v2470_v49 = vld [vmem:[%s3608_s5 + $0x28] sm:$0xff] }
0x161d   : > { %2215 = vperm.xlu0 %2828, %v2195_v21   ;;  %2210 = vperm.xlu1 %2827, %v2194_v23  }
0x1621   : > { %2830 = vset.pattern.permute.xlu0 %v2956_v54  ;;  %2829 = vset.pattern.permute.xlu1 %v2956_v54  ;;  %v2488_v54 = vld [vmem:[%s3608_s5 + $0x30] sm:$0xff] }
0x1622   : > { %1568 = vperm.xlu0 %2830, %v2469_v25   ;;  %908 = vperm.xlu1 %2829, %v317_v29  }
0x1626   : > { %913 = vperm.xlu1 %2829, %v318_v45   ;;  %2228 = vperm.xlu0 %2830, %v2489_v52  }
0x1627   : > { %v2204_v26 = vpop.permute.xlu1 %2203  ;;  %v2199_v27 = vpop.permute.xlu0 %2198 }
0x1628   : > { %v2207_v19 = vmul.f32 %v2204_v26, %v3451_v36  ;;  %v2206_v28 = vmul.f32 %v2199_v27, %v3458_v42 }
0x162a   : > { %1573 = vperm.xlu1 %2829, %v2470_v49  }
0x162e   : > { %2223 = vperm.xlu1 %2829, %v2488_v54  }
0x1632   : > { %2233 = vperm.xlu1 %2829, %v2490_v11  }
0x1698   : > { %v2211_v30 = vpop.permute.xlu1 %2210  ;;  %v2216_v31 = vpop.permute.xlu0 %2215 }
0x1699   : > { %v2218_v32 = vadd.f32 %v2211_v30, %v2206_v28  ;;  %v2219_v33 = vadd.f32 %v2216_v31, %v2207_v19 }
0x169b   : > { %v2220_v34 = vpack.c.bf16 %v2219_v33, %v2218_v32 }
0x169d   : > { %2675 = vmatprep.subr.bf16.mxu0 %v2220_v34  ;;  %v909_v1 = vpop.permute.xlu1 %908  ;;  %v1569_v22 = vpop.permute.xlu0 %1568 }
0x169e   : > { %2676 = vmatpush3.bf16.msra.mxu0 %v2220_v34  ;;  %v968_v56 = vadd.f32 %v3279_v14, %v909_v1  ;;  %v1628_v0 = vadd.f32 %v3412_v16, %v1569_v22 }
0x16a0   : > { %v1639_v53 = vadd.f32 %v1628_v0, %v968_v56 }
0x16a1   : > { %2678 = vmatmul.mubr.msk.bf16.vlgmr.msra.gmra.mxu0 %vm386_vm3, %v2839_v35  ;;  %v914_v46 = vpop.permute.xlu1 %913  ;;  %v2229_v16 = vpop.permute.xlu0 %2228 }
0x16a2   : > { %v973_v38 = vadd.f32 %v3242_v48, %v914_v46 }
0x16a5   : > { %v1574_v3 = vpop.permute.xlu1 %1573 }
0x16a6   : > { %v1633_v47 = vadd.f32 %v3375_v50, %v1574_v3 }
0x16a8   : > { %v1640_v42 = vadd.f32 %v1633_v47, %v973_v38 }
0x16a9   : > { %v2224_v36 = vpop.permute.xlu1 %2223 }
0x16ad   : > { %v2234_v39 = vpop.permute.xlu1 %2233 }
0x1761   : > { %v2679_v41 = vpop.f32.mrf.mxu0 }
0x1762   : > { %v2293_v43 = vadd.f32 %v2679_v41, %v2234_v39 }
0x1763   : > { %v2284_v44 = vpop.f32.mrf.mxu0 }
0x1764   : > { %v2300_v57 = vadd.f32 %v2293_v43, %v1640_v42  ;;  %v2285_v48 = vadd.f32 %v2284_v44, %v2224_v36 }
0x1765   : > { %v2680_v50 = vpop.f32.mrf.mxu0 }
0x1766   : > { %2303 = vst [vmem:[%s3519_s19 + $0x8] sm:$0xff] %v2300_v57  ;;  %v2298_v40 = vadd.f32 %v2285_v48, %v3378_v61 }
0x1767   : > { %v2287_v14 = vpop.f32.mrf.mxu0 }
0x1768   : > { %v2288_v59 = vadd.f32 %v2287_v14, %v2229_v16  ;;  %2301 = vst [vmem:[%s288_s16] sm:$0xff] %v2298_v40 }
0x1769   : > { %2867 = shalt.err (!%p2864_p3)
}
0x176a   : > { %s2868_s16 = scalar_lea.hbm %s3527_s17, 128  ;;  %s2872_s15 = scalar_lea.hbm %s3609_s6, 256 }
0x176b   : > { %p2869_p4 = scmp.ne.s32.totalorder %s3527_s17, %s2868_s16  ;;  %p2873_p9 = scmp.lt.s32.totalorder %s3527_s17, %s3609_s6 }
0x176c   : > { %p2874_p10 = scmp.lt.s32.totalorder %s2872_s15, %s2868_s16 }
0x176d   : > { %p2870_p7 = pnand %p2869_p4, %p3047_p5 }
0x176e   : > { %p2875_p11 = por %p2874_p10, %p2873_p9 }
0x176f   : > { %p2871_p8 = pneg %p2870_p7 }
0x1771   : > { %p2876_p12 = pnand %p2875_p11, %p2871_p8 }
0x1773   : > { %2879 = shalt.err (!%p2876_p12)
}
0x1774   : > { %2717 = dma.vmem_to_hbm [thread:$0]  (%p3047_p5), %s3529_s18, 128, %s3527_s17, %s2305_s9   ;;  %v2299_v61 = vadd.f32 %v2288_v59, %v1639_v53 }
0x1775   : > { %s3615_s21 = sshll.u32 %s3030_s28, 8  ;;  %s2310_s14 = scalar_lea.sflag [#allocation5], %s3510_s8 }
0x1776   : > { %s3560_s13 = scalar_lea.hbm %s3610_s7, %s3615_s21  ;;  %2302 = vst [vmem:[%s3519_s19] sm:$0xff] %v2299_v61  ;;  %s2880_s16 = scalar_lea.vmem %s3531_s20, 256 }
0x1777   : > { %p2881_p13 = scmp.ne.s32.totalorder %s3531_s20, %s2880_s16  ;;  %s2966_s22 = smov [#allocation4]  }
0x1778   : > { %s2884_s23 = sshll.u32 %s2966_s22, 4  ;;  %s2885_s23 = int_to_ptr.vmem [resolvable:$false] %s2884_s23 }
0x1779   : > { %p2882_p0 = pnand %p2881_p13, %p3047_p5  ;;  %s2886_s15 = scalar_lea.vmem %s2885_s23, 512 }
0x177a   : > { %p2887_p2 = scmp.lt.s32.totalorder %s3531_s20, %s2885_s23  ;;  %p2888_p3 = scmp.lt.s32.totalorder %s2886_s15, %s2880_s16 }
0x177b   : > { %p2883_p1 = pneg %p2882_p0 }
0x177c   : > { %p2889_p4 = por %p2888_p3, %p2887_p2 }
0x177e   : > { %p2890_p7 = pnand %p2889_p4, %p2883_p1 }
0x1780   : > { %2893 = shalt.err (!%p2890_p7)
}
0x1781   : > { %s2894_s28 = scalar_lea.hbm %s3560_s13, 256  ;;  %s2898_s17 = scalar_lea.hbm %s3610_s7, 512 }
0x1782   : > { %p2895_p8 = scmp.ne.s32.totalorder %s3560_s13, %s2894_s28  ;;  %p2899_p11 = scmp.lt.s32.totalorder %s3560_s13, %s3610_s7 }
0x1783   : > { %p2900_p12 = scmp.lt.s32.totalorder %s2898_s17, %s2894_s28 }
0x1784   : > { %p2896_p9 = pnand %p2895_p8, %p3047_p5 }
0x1785   : > { %p2901_p13 = por %p2900_p12, %p2899_p11 }
0x1786   : > { %p2897_p10 = pneg %p2896_p9 }
0x1788   : > { %p2902_p0 = pnand %p2901_p13, %p2897_p10 }
0x178a   : > { %2905 = shalt.err (!%p2902_p0)
}
0x178b   : > { %s2967_s0 = smov 128   ;;  %s2968_s29 = smov 8  }
0x178c   : > { %2718 = dma.vmem_to_hbm [thread:$0]  (%p3047_p5), %s3531_s20, 256, %s3560_s13, %s2310_s14, %s2967_s0, %s2967_s0, %s2968_s29  }
0x178d PF: > { %p2728_p1 = scmp.ge.s32.totalorder %s2944_s27, 2  ;;  %s2351_s16 = sand.u32 1, %s2932_s24  }
0x178e   : > { %s2352_s22 = scalar_lea.sflag [#allocation3], %s2351_s16 }
0x178f   : > { %p2722_p2 = pnand %p2728_p1, %p3051_p6 }
0x1791   : > { %p2723_p3 = pneg %p2722_p2 }
0x1793   : > { %2923 = dma.done.wait (%p2723_p3), %s2352_s22, 128  }
0x1794   : > { %2925 = vsyncadd (%p2723_p3), %s2352_s22, 4294967168  ;;  %s2361_s23 = scalar_lea.sflag [#allocation5], %s2351_s16 }
0x1795   : > { %2927 = dma.done.wait (%p2723_p3), %s2361_s23, 256  }
0x1796   : > { %2929 = vsyncadd (%p2723_p3), %s2361_s23, 4294967040  ;;  %p21_p5 = scmp.ge.s32.totalorder %s3034_s30, 4   ;;  %s3616_s24 = smov %s2936_s25 }
0x1797   : > { %s3617_s25 = smov %s2940_s26  ;;  %s3618_s26 = smov %s3045_s10 }
0x1798   : > { %s3619_s27 = smov %s3034_s30  ;;  %23 = sbr.rel (!%p21_p5) target bundleno = 7 (0x7), region = 107 }
0x179d   :  { %2366 = vsyncpa [#allocation3], 1 }
0x179e   :  { %2368 = vsyncpa [#allocation3 + $0x1], 1 }
0x179f   :  { %2369 = vsyncpa [#allocation5], 1 }
0x17a0   :  { %2371 = vsyncpa [#allocation5 + $0x1], 1 }

</bundles_post_ra>
